<compile_context>
chip_gen: v7x
topology: tpu7x:2x2x1
jax: 0.10.0
libtpu: 0.0.40
codegen_flags: <defaults>
</compile_context>

<pallas_src>
import functools

import jax
import jax.numpy as jnp
from jax.experimental import pallas as pl
from jax.experimental.pallas import tpu as pltpu

_EPS = 1e-5  # nn.LayerNorm default


def _cdiv(a, n):
    return (a + n - 1) // n


def _round_up(x, n):
    return _cdiv(x, n) * n


def _vmem_capacity_bytes():
    """Physical VMEM of the local TPU core (conservative fallback)."""
    try:
        cap = int(pltpu.get_tpu_info().vmem_capacity_bytes)
        if cap > 0:
            return cap
    except Exception:
        pass
    return 64 << 20  # v7x per-TensorCore VMEM = smallest of v5e/v6e/v7x


def _patch_expand_kernel(x_ref, w_ref, gb_ref, o_ref, *, cp, compute_dtype):
    # x_ref : (1, c, t)   NCHW input block (original dtype); t spatial columns
    # w_ref : (2c, c)     expand weight (compute dtype), resident
    # gb_ref: (2, cp, 1)  gamma / beta column vectors (f32), resident
    # o_ref : (1, 2c, t)  expanded + per-group-normalized columns
    x = x_ref[0].astype(compute_dtype)                          # (c, t)
    y = jnp.dot(w_ref[...], x,
                preferred_element_type=jnp.float32)             # (2c, t) f32
    gamma = gb_ref[0]                                           # (cp, 1)
    beta = gb_ref[1]                                            # (cp, 1)
    inv_cp = 1.0 / cp
    # Each contiguous group of cp output channels (= one (p1, p2) position of
    # the pixel shuffle) gets an independent LayerNorm per spatial column.
    # The slices are sublane-aligned (cp is a multiple of 8 for Swin dims),
    # reductions run over sublanes, and every store is full lane width — no
    # concatenate, no masked lane stores even when 2*dim < 128.
    for gi in range(4):
        seg = y[gi * cp:(gi + 1) * cp, :]                       # (cp, t)
        mu = jnp.sum(seg, axis=0, keepdims=True) * inv_cp       # (1, t)
        d = seg - mu
        var = jnp.sum(d * d, axis=0, keepdims=True) * inv_cp    # two-pass, >=0
        yn = d * jax.lax.rsqrt(var + _EPS)
        o_ref[0, gi * cp:(gi + 1) * cp, :] = (
            yn * gamma + beta).astype(o_ref.dtype)


def patch_expand(x, expand_weight, gamma, beta, *, t_hw=512,
                 compute_dtype=jnp.bfloat16, out_dtype=None):
    """PatchExpand forward.

    x             : (b, c, h, w)  NCHW, like the PyTorch module
    expand_weight : (2*c, c)      nn.Linear(dim, 2*dim, bias=False).weight
    gamma, beta   : (c//2,)       nn.LayerNorm(dim//2) params
    t_hw          : preferred spatial tile (lanes) per grid step
    compute_dtype : dtype of the MXU matmul operands (f32 accumulate; the
                    LayerNorm / affine always run in f32)
    out_dtype     : output dtype; defaults to bf16 when compute_dtype is bf16
                    (halves store + epilogue HBM traffic), else x.dtype
    returns       : (b, c//2, 2h, 2w)  NCHW
    """
    b, c, h, w = x.shape
    assert c % 2 == 0, "PatchExpand needs an even channel count"
    cp = c // 2
    c2 = 2 * c
    hw = h * w

    if out_dtype is None:
        out_dtype = (jnp.bfloat16
                     if jnp.dtype(compute_dtype) == jnp.dtype(jnp.bfloat16)
                     else x.dtype)

    x_isz = jnp.dtype(x.dtype).itemsize
    comp_isz = jnp.dtype(compute_dtype).itemsize
    out_isz = jnp.dtype(out_dtype).itemsize

    cap = _vmem_capacity_bytes()
    budget = int(0.70 * cap)   # pipeline buffers + in-kernel f32 temporaries

    def vmem_est(t):
        return (2 * c * t * x_isz            # input tile, double-buffered
                + 2 * c2 * c * comp_isz      # resident weight (<=2 buffers)
                + 2 * 2 * cp * 128 * 4       # gamma/beta slab (lane-padded)
                + 2 * c2 * t * out_isz       # output tile, double-buffered
                + 3 * c2 * t * 4)            # in-kernel f32 temps (y, d, yn)

    # Spatial tile: full extent for small images, otherwise a multiple of 128
    # lanes, shrunk until it fits the VMEM budget.
    if hw <= max(t_hw, 128):
        t = hw
    else:
        t = _round_up(min(t_hw, hw), 128)
        while t > 128 and vmem_est(t) > budget:
            t = max(128, _round_up(t // 2, 128))
    n_t = _cdiv(hw, t)
    # Guarantee >=2 grid steps when possible so a v7x megacore can split the
    # "parallel" grid across both TensorCores.
    if b * n_t < 2 and hw >= 256:
        t = _round_up(_cdiv(hw, 2), 128)
        n_t = _cdiv(hw, t)

    vmem_limit = int(min(max(int(1.5 * vmem_est(t)), 32 << 20),
                         cap - (8 << 20)))

    xv = x.reshape(b, c, hw)                    # metadata-only reshape (NCHW kept)
    w_c = expand_weight.astype(compute_dtype)   # (2c, c); kernel does y = W @ x
    gb = jnp.stack([gamma, beta]).astype(jnp.float32).reshape(2, cp, 1)

    kernel = functools.partial(_patch_expand_kernel, cp=cp,
                               compute_dtype=compute_dtype)

    def build_call(single_buffer_resident):
        res_kw = {}
        if single_buffer_resident and hasattr(pl, "Buffered"):
            # Resident operands (constant index_map) do not need double
            # buffering; halving their footprint matters under v7x's 64 MiB.
            res_kw = dict(pipeline_mode=pl.Buffered(buffer_count=1))
        grid_spec = pltpu.PrefetchScalarGridSpec(
            num_scalar_prefetch=0,
            grid=(b, n_t),
            in_specs=[
                pl.BlockSpec((1, c, t), lambda bi, ti: (bi, 0, ti)),
                pl.BlockSpec((c2, c), lambda bi, ti: (0, 0), **res_kw),
                pl.BlockSpec((2, cp, 1), lambda bi, ti: (0, 0, 0), **res_kw),
            ],
            out_specs=pl.BlockSpec((1, c2, t), lambda bi, ti: (bi, 0, ti)),
        )
        return pl.pallas_call(
            kernel,
            out_shape=jax.ShapeDtypeStruct((b, c2, hw), out_dtype),
            grid_spec=grid_spec,
            compiler_params=pltpu.CompilerParams(
                dimension_semantics=("parallel", "parallel"),
                vmem_limit_bytes=vmem_limit),
        )

    try:
        out_flat = build_call(True)(xv, w_c, gb)
    except Exception:
        # pl.Buffered(1) unsupported on this jax/Mosaic version: fall back to
        # default double buffering (identical results, slightly more VMEM).
        out_flat = build_call(False)(xv, w_c, gb)

    # Epilogue: pixel-shuffle 'b (p1 p2 c) (h w) -> b c (h p1) (w p2)' fused
    # with NCHW packing into ONE 6-D transpose on the (bf16) kernel output.
    y = out_flat.reshape(b, 2, 2, cp, h, w)
    y = jnp.transpose(y, (0, 3, 4, 1, 5, 2)).reshape(b, cp, 2 * h, 2 * w)
    return y


def _reference(x, expand_weight, gamma, beta):
    """Pure-JAX reference mirroring the PyTorch forward."""
    b, c, h, w = x.shape
    cp = c // 2
    xf = jnp.transpose(x, (0, 2, 3, 1)).reshape(b, h * w, c)
    y = xf @ expand_weight.T                                  # (b, hw, 2c)
    y = y.reshape(b, h, w, 2, 2, cp)
    y = jnp.transpose(y, (0, 1, 3, 2, 4, 5)).reshape(b, 4 * h * w, cp)
    mu = jnp.mean(y, axis=-1, keepdims=True)
    var = jnp.mean((y - mu) ** 2, axis=-1, keepdims=True)
    y = (y - mu) * jax.lax.rsqrt(var + _EPS) * gamma + beta
    y = jnp.transpose(y, (0, 2, 1)).reshape(b, cp, 2 * h, 2 * w)
    return y


if __name__ == "__main__":
    key = jax.random.PRNGKey(0)
    kx, kw, kg, kb = jax.random.split(key, 4)

    B, C, H, W = 2, 64, 16, 16        # dim = 64 -> expand to 128, norm over 32
    x = jax.random.normal(kx, (B, C, H, W), dtype=jnp.float32)

    # Deterministic synthetic parameters (module __init__ shapes).
    expand_weight = 0.02 * jax.random.normal(kw, (2 * C, C), dtype=jnp.float32)
    gamma = 1.0 + 0.1 * jax.random.normal(kg, (C // 2,), dtype=jnp.float32)
    beta = 0.05 * jax.random.normal(kb, (C // 2,), dtype=jnp.float32)

    ref = _reference(x, expand_weight, gamma, beta)

    # Strict semantics check: f32 matmul operands, f32 output.
    out_f32 = jax.block_until_ready(
        patch_expand(x, expand_weight, gamma, beta,
                     compute_dtype=jnp.float32, out_dtype=jnp.float32))
    assert out_f32.shape == (B, C // 2, 2 * H, 2 * W), out_f32.shape
    assert jnp.allclose(out_f32, ref, atol=1e-4, rtol=1e-4)

    # Default fast path: bf16 matmul operands + bf16 output (f32 accumulate
    # and f32 LayerNorm inside).  Looser tolerance by construction.
    out_fast = jax.block_until_ready(
        patch_expand(x, expand_weight, gamma, beta))
    assert out_fast.shape == (B, C // 2, 2 * H, 2 * W), out_fast.shape
    assert out_fast.dtype == jnp.bfloat16
    assert jnp.allclose(out_fast.astype(jnp.float32), ref, atol=1e-1, rtol=1e-1)

    print("KERNEL_OK")
</pallas_src>

<mosaic_0001>
module attributes {stable_mosaic.version = 11 : i64} {
  func.func @_patch_expand_kernel(%arg0: i32, %arg1: i32, %arg2: memref<1x64x256xf32, #tpu.memory_space<vmem>>, %arg3: memref<128x64xf32, #tpu.memory_space<vmem>>, %arg4: memref<2x32x1xf32, #tpu.memory_space<vmem>>, %arg5: memref<1x128x256xf32, #tpu.memory_space<vmem>>) attributes {dimension_semantics = [#tpu.dimension_semantics<parallel>, #tpu.dimension_semantics<parallel>], iteration_bounds = array<i64: 2, 1>, scalar_prefetch = 0 : i64, scratch_operands = 0 : i64, tpu.core_type = #tpu.core_type<tc>, window_params = [{transform_indices = @transform_0, window_bounds = array<i64: 1, 64, 256>}, {pipeline_mode = #tpu.pipeline_mode<synchronous>, transform_indices = @transform_1, window_bounds = array<i64: 128, 64>}, {pipeline_mode = #tpu.pipeline_mode<synchronous>, transform_indices = @transform_2, window_bounds = array<i64: 2, 32, 1>}, {transform_indices = @transform_3, window_bounds = array<i64: 1, 128, 256>}]} {
    %c0 = arith.constant 0 : index
    %c0_0 = arith.constant 0 : index
    %c0_1 = arith.constant 0 : index
    %0 = vector.load %arg2[%c0, %c0_0, %c0_1] : memref<1x64x256xf32, #tpu.memory_space<vmem>>, vector<1x64x256xf32>
    %1 = vector.shape_cast %0 : vector<1x64x256xf32> to vector<64x256xf32>
    %c0_2 = arith.constant 0 : index
    %c0_3 = arith.constant 0 : index
    %2 = vector.load %arg3[%c0_2, %c0_3] : memref<128x64xf32, #tpu.memory_space<vmem>>, vector<128x64xf32>
    %cst = arith.constant dense<0.000000e+00> : vector<128x256xf32>
    %3 = tpu.matmul %2, %1, %cst {dimension_numbers = #tpu.dot_dimension_numbers<[1], [0], [0], [1], [0, 0, 1, 1], [], []>} : vector<128x64xf32>, vector<64x256xf32>, vector<128x256xf32> -> vector<128x256xf32>
    %c0_4 = arith.constant 0 : index
    %c0_5 = arith.constant 0 : index
    %c0_6 = arith.constant 0 : index
    %4 = vector.load %arg4[%c0_4, %c0_5, %c0_6] : memref<2x32x1xf32, #tpu.memory_space<vmem>>, vector<1x32x1xf32>
    %5 = vector.shape_cast %4 : vector<1x32x1xf32> to vector<32x1xf32>
    %c1 = arith.constant 1 : index
    %c0_7 = arith.constant 0 : index
    %c0_8 = arith.constant 0 : index
    %6 = vector.load %arg4[%c1, %c0_7, %c0_8] : memref<2x32x1xf32, #tpu.memory_space<vmem>>, vector<1x32x1xf32>
    %7 = vector.shape_cast %6 : vector<1x32x1xf32> to vector<32x1xf32>
    %8 = vector.extract_strided_slice %3 {offsets = [0, 0], sizes = [32, 256], strides = [1, 1]} : vector<128x256xf32> to vector<32x256xf32>
    %cst_9 = arith.constant dense<0.000000e+00> : vector<256xf32>
    %9 = vector.multi_reduction <add>, %8, %cst_9 [0] : vector<32x256xf32> to vector<256xf32>
    %10 = vector.shape_cast %9 : vector<256xf32> to vector<1x256xf32>
    %cst_10 = arith.constant 3.125000e-02 : f32
    %11 = vector.broadcast %cst_10 : f32 to vector<1x256xf32>
    %12 = arith.mulf %10, %11 : vector<1x256xf32>
    %13 = vector.broadcast %12 : vector<1x256xf32> to vector<32x256xf32>
    %14 = arith.subf %8, %13 : vector<32x256xf32>
    %15 = arith.mulf %14, %14 : vector<32x256xf32>
    %cst_11 = arith.constant dense<0.000000e+00> : vector<256xf32>
    %16 = vector.multi_reduction <add>, %15, %cst_11 [0] : vector<32x256xf32> to vector<256xf32>
    %17 = vector.shape_cast %16 : vector<256xf32> to vector<1x256xf32>
    %cst_12 = arith.constant 3.125000e-02 : f32
    %18 = vector.broadcast %cst_12 : f32 to vector<1x256xf32>
    %19 = arith.mulf %17, %18 : vector<1x256xf32>
    %cst_13 = arith.constant 9.99999974E-6 : f32
    %20 = vector.broadcast %cst_13 : f32 to vector<1x256xf32>
    %21 = arith.addf %19, %20 : vector<1x256xf32>
    %22 = math.rsqrt %21 : vector<1x256xf32>
    %23 = vector.broadcast %22 : vector<1x256xf32> to vector<32x256xf32>
    %24 = arith.mulf %14, %23 : vector<32x256xf32>
    %25 = vector.broadcast %5 : vector<32x1xf32> to vector<32x256xf32>
    %26 = arith.mulf %24, %25 : vector<32x256xf32>
    %27 = vector.broadcast %7 : vector<32x1xf32> to vector<32x256xf32>
    %28 = arith.addf %26, %27 : vector<32x256xf32>
    %c0_14 = arith.constant 0 : index
    %c0_15 = arith.constant 0 : index
    %c0_16 = arith.constant 0 : index
    %29 = vector.load %arg5[%c0_14, %c0_15, %c0_16] : memref<1x128x256xf32, #tpu.memory_space<vmem>>, vector<1x32x256xf32>
    %30 = vector.shape_cast %29 : vector<1x32x256xf32> to vector<32x256xf32>
    %31 = vector.shape_cast %28 : vector<32x256xf32> to vector<1x32x256xf32>
    tpu.vector_store %arg5[%c0_14, %c0_15, %c0_16], %31 {strides = array<i32>} : memref<1x128x256xf32, #tpu.memory_space<vmem>>, vector<1x32x256xf32>,
    %32 = vector.extract_strided_slice %3 {offsets = [32, 0], sizes = [32, 256], strides = [1, 1]} : vector<128x256xf32> to vector<32x256xf32>
    %cst_17 = arith.constant dense<0.000000e+00> : vector<256xf32>
    %33 = vector.multi_reduction <add>, %32, %cst_17 [0] : vector<32x256xf32> to vector<256xf32>
    %34 = vector.shape_cast %33 : vector<256xf32> to vector<1x256xf32>
    %cst_18 = arith.constant 3.125000e-02 : f32
    %35 = vector.broadcast %cst_18 : f32 to vector<1x256xf32>
    %36 = arith.mulf %34, %35 : vector<1x256xf32>
    %37 = vector.broadcast %36 : vector<1x256xf32> to vector<32x256xf32>
    %38 = arith.subf %32, %37 : vector<32x256xf32>
    %39 = arith.mulf %38, %38 : vector<32x256xf32>
    %cst_19 = arith.constant dense<0.000000e+00> : vector<256xf32>
    %40 = vector.multi_reduction <add>, %39, %cst_19 [0] : vector<32x256xf32> to vector<256xf32>
    %41 = vector.shape_cast %40 : vector<256xf32> to vector<1x256xf32>
    %cst_20 = arith.constant 3.125000e-02 : f32
    %42 = vector.broadcast %cst_20 : f32 to vector<1x256xf32>
    %43 = arith.mulf %41, %42 : vector<1x256xf32>
    %cst_21 = arith.constant 9.99999974E-6 : f32
    %44 = vector.broadcast %cst_21 : f32 to vector<1x256xf32>
    %45 = arith.addf %43, %44 : vector<1x256xf32>
    %46 = math.rsqrt %45 : vector<1x256xf32>
    %47 = vector.broadcast %46 : vector<1x256xf32> to vector<32x256xf32>
    %48 = arith.mulf %38, %47 : vector<32x256xf32>
    %49 = vector.broadcast %5 : vector<32x1xf32> to vector<32x256xf32>
    %50 = arith.mulf %48, %49 : vector<32x256xf32>
    %51 = vector.broadcast %7 : vector<32x1xf32> to vector<32x256xf32>
    %52 = arith.addf %50, %51 : vector<32x256xf32>
    %c0_22 = arith.constant 0 : index
    %c32 = arith.constant 32 : index
    %c0_23 = arith.constant 0 : index
    %53 = vector.load %arg5[%c0_22, %c32, %c0_23] : memref<1x128x256xf32, #tpu.memory_space<vmem>>, vector<1x32x256xf32>
    %54 = vector.shape_cast %53 : vector<1x32x256xf32> to vector<32x256xf32>
    %55 = vector.shape_cast %52 : vector<32x256xf32> to vector<1x32x256xf32>
    tpu.vector_store %arg5[%c0_22, %c32, %c0_23], %55 {strides = array<i32>} : memref<1x128x256xf32, #tpu.memory_space<vmem>>, vector<1x32x256xf32>,
    %56 = vector.extract_strided_slice %3 {offsets = [64, 0], sizes = [32, 256], strides = [1, 1]} : vector<128x256xf32> to vector<32x256xf32>
    %cst_24 = arith.constant dense<0.000000e+00> : vector<256xf32>
    %57 = vector.multi_reduction <add>, %56, %cst_24 [0] : vector<32x256xf32> to vector<256xf32>
    %58 = vector.shape_cast %57 : vector<256xf32> to vector<1x256xf32>
    %cst_25 = arith.constant 3.125000e-02 : f32
    %59 = vector.broadcast %cst_25 : f32 to vector<1x256xf32>
    %60 = arith.mulf %58, %59 : vector<1x256xf32>
    %61 = vector.broadcast %60 : vector<1x256xf32> to vector<32x256xf32>
    %62 = arith.subf %56, %61 : vector<32x256xf32>
    %63 = arith.mulf %62, %62 : vector<32x256xf32>
    %cst_26 = arith.constant dense<0.000000e+00> : vector<256xf32>
    %64 = vector.multi_reduction <add>, %63, %cst_26 [0] : vector<32x256xf32> to vector<256xf32>
    %65 = vector.shape_cast %64 : vector<256xf32> to vector<1x256xf32>
    %cst_27 = arith.constant 3.125000e-02 : f32
    %66 = vector.broadcast %cst_27 : f32 to vector<1x256xf32>
    %67 = arith.mulf %65, %66 : vector<1x256xf32>
    %cst_28 = arith.constant 9.99999974E-6 : f32
    %68 = vector.broadcast %cst_28 : f32 to vector<1x256xf32>
    %69 = arith.addf %67, %68 : vector<1x256xf32>
    %70 = math.rsqrt %69 : vector<1x256xf32>
    %71 = vector.broadcast %70 : vector<1x256xf32> to vector<32x256xf32>
    %72 = arith.mulf %62, %71 : vector<32x256xf32>
    %73 = vector.broadcast %5 : vector<32x1xf32> to vector<32x256xf32>
    %74 = arith.mulf %72, %73 : vector<32x256xf32>
    %75 = vector.broadcast %7 : vector<32x1xf32> to vector<32x256xf32>
    %76 = arith.addf %74, %75 : vector<32x256xf32>
    %c0_29 = arith.constant 0 : index
    %c64 = arith.constant 64 : index
    %c0_30 = arith.constant 0 : index
    %77 = vector.load %arg5[%c0_29, %c64, %c0_30] : memref<1x128x256xf32, #tpu.memory_space<vmem>>, vector<1x32x256xf32>
    %78 = vector.shape_cast %77 : vector<1x32x256xf32> to vector<32x256xf32>
    %79 = vector.shape_cast %76 : vector<32x256xf32> to vector<1x32x256xf32>
    tpu.vector_store %arg5[%c0_29, %c64, %c0_30], %79 {strides = array<i32>} : memref<1x128x256xf32, #tpu.memory_space<vmem>>, vector<1x32x256xf32>,
    %80 = vector.extract_strided_slice %3 {offsets = [96, 0], sizes = [32, 256], strides = [1, 1]} : vector<128x256xf32> to vector<32x256xf32>
    %cst_31 = arith.constant dense<0.000000e+00> : vector<256xf32>
    %81 = vector.multi_reduction <add>, %80, %cst_31 [0] : vector<32x256xf32> to vector<256xf32>
    %82 = vector.shape_cast %81 : vector<256xf32> to vector<1x256xf32>
    %cst_32 = arith.constant 3.125000e-02 : f32
    %83 = vector.broadcast %cst_32 : f32 to vector<1x256xf32>
    %84 = arith.mulf %82, %83 : vector<1x256xf32>
    %85 = vector.broadcast %84 : vector<1x256xf32> to vector<32x256xf32>
    %86 = arith.subf %80, %85 : vector<32x256xf32>
    %87 = arith.mulf %86, %86 : vector<32x256xf32>
    %cst_33 = arith.constant dense<0.000000e+00> : vector<256xf32>
    %88 = vector.multi_reduction <add>, %87, %cst_33 [0] : vector<32x256xf32> to vector<256xf32>
    %89 = vector.shape_cast %88 : vector<256xf32> to vector<1x256xf32>
    %cst_34 = arith.constant 3.125000e-02 : f32
    %90 = vector.broadcast %cst_34 : f32 to vector<1x256xf32>
    %91 = arith.mulf %89, %90 : vector<1x256xf32>
    %cst_35 = arith.constant 9.99999974E-6 : f32
    %92 = vector.broadcast %cst_35 : f32 to vector<1x256xf32>
    %93 = arith.addf %91, %92 : vector<1x256xf32>
    %94 = math.rsqrt %93 : vector<1x256xf32>
    %95 = vector.broadcast %94 : vector<1x256xf32> to vector<32x256xf32>
    %96 = arith.mulf %86, %95 : vector<32x256xf32>
    %97 = vector.broadcast %5 : vector<32x1xf32> to vector<32x256xf32>
    %98 = arith.mulf %96, %97 : vector<32x256xf32>
    %99 = vector.broadcast %7 : vector<32x1xf32> to vector<32x256xf32>
    %100 = arith.addf %98, %99 : vector<32x256xf32>
    %c0_36 = arith.constant 0 : index
    %c96 = arith.constant 96 : index
    %c0_37 = arith.constant 0 : index
    %101 = vector.load %arg5[%c0_36, %c96, %c0_37] : memref<1x128x256xf32, #tpu.memory_space<vmem>>, vector<1x32x256xf32>
    %102 = vector.shape_cast %101 : vector<1x32x256xf32> to vector<32x256xf32>
    %103 = vector.shape_cast %100 : vector<32x256xf32> to vector<1x32x256xf32>
    tpu.vector_store %arg5[%c0_36, %c96, %c0_37], %103 {strides = array<i32>} : memref<1x128x256xf32, #tpu.memory_space<vmem>>, vector<1x32x256xf32>,
    return
  }
  func.func @transform_0(%arg0: i32, %arg1: i32) -> (i32, i32, i32) {
    %c0_i32 = arith.constant 0 : i32
    %c0_i32_0 = arith.constant 0 : i32
    return %arg0, %c0_i32, %arg1 : i32, i32, i32
  }
  func.func @transform_1(%arg0: i32, %arg1: i32) -> (i32, i32) {
    %c0_i32 = arith.constant 0 : i32
    %c0_i32_0 = arith.constant 0 : i32
    %c0_i32_1 = arith.constant 0 : i32
    return %c0_i32, %c0_i32_0 : i32, i32
  }
  func.func @transform_2(%arg0: i32, %arg1: i32) -> (i32, i32, i32) {
    %c0_i32 = arith.constant 0 : i32
    %c0_i32_0 = arith.constant 0 : i32
    %c0_i32_1 = arith.constant 0 : i32
    %c0_i32_2 = arith.constant 0 : i32
    return %c0_i32, %c0_i32_0, %c0_i32_1 : i32, i32, i32
  }
  func.func @transform_3(%arg0: i32, %arg1: i32) -> (i32, i32, i32) {
    %c0_i32 = arith.constant 0 : i32
    %c0_i32_0 = arith.constant 0 : i32
    return %arg0, %c0_i32, %arg1 : i32, i32, i32
  }
}

module attributes {stable_mosaic.version = 11 : i64} {
  func.func @_patch_expand_kernel(%arg0: i32, %arg1: i32, %arg2: memref<1x64x256xf32, #tpu.memory_space<vmem>>, %arg3: memref<128x64xf32, #tpu.memory_space<vmem>>, %arg4: memref<2x32x1xf32, #tpu.memory_space<vmem>>, %arg5: memref<1x128x256xf32, #tpu.memory_space<vmem>>) attributes {dimension_semantics = [#tpu.dimension_semantics<parallel>, #tpu.dimension_semantics<parallel>], iteration_bounds = array<i64: 2, 1>, scalar_prefetch = 0 : i64, scratch_operands = 0 : i64, tpu.core_type = #tpu.core_type<tc>, window_params = [{transform_indices = @transform_0, window_bounds = array<i64: 1, 64, 256>}, {pipeline_mode = #tpu.pipeline_mode<synchronous>, transform_indices = @transform_1, window_bounds = array<i64: 128, 64>}, {pipeline_mode = #tpu.pipeline_mode<synchronous>, transform_indices = @transform_2, window_bounds = array<i64: 2, 32, 1>}, {transform_indices = @transform_3, window_bounds = array<i64: 1, 128, 256>}]} {
    %c0 = arith.constant 0 : index
    %c0_0 = arith.constant 0 : index
    %c0_1 = arith.constant 0 : index
    %0 = vector.load %arg2[%c0, %c0_0, %c0_1] : memref<1x64x256xf32, #tpu.memory_space<vmem>>, vector<1x64x256xf32>
    %1 = vector.shape_cast %0 : vector<1x64x256xf32> to vector<64x256xf32>
    %c0_2 = arith.constant 0 : index
    %c0_3 = arith.constant 0 : index
    %2 = vector.load %arg3[%c0_2, %c0_3] : memref<128x64xf32, #tpu.memory_space<vmem>>, vector<128x64xf32>
    %cst = arith.constant dense<0.000000e+00> : vector<128x256xf32>
    %3 = tpu.matmul %2, %1, %cst {dimension_numbers = #tpu.dot_dimension_numbers<[1], [0], [0], [1], [0, 0, 1, 1], [], []>} : vector<128x64xf32>, vector<64x256xf32>, vector<128x256xf32> -> vector<128x256xf32>
    %c0_4 = arith.constant 0 : index
    %c0_5 = arith.constant 0 : index
    %c0_6 = arith.constant 0 : index
    %4 = vector.load %arg4[%c0_4, %c0_5, %c0_6] : memref<2x32x1xf32, #tpu.memory_space<vmem>>, vector<1x32x1xf32>
    %5 = vector.shape_cast %4 : vector<1x32x1xf32> to vector<32x1xf32>
    %c1 = arith.constant 1 : index
    %c0_7 = arith.constant 0 : index
    %c0_8 = arith.constant 0 : index
    %6 = vector.load %arg4[%c1, %c0_7, %c0_8] : memref<2x32x1xf32, #tpu.memory_space<vmem>>, vector<1x32x1xf32>
    %7 = vector.shape_cast %6 : vector<1x32x1xf32> to vector<32x1xf32>
    %8 = vector.extract_strided_slice %3 {offsets = [0, 0], sizes = [32, 256], strides = [1, 1]} : vector<128x256xf32> to vector<32x256xf32>
    %cst_9 = arith.constant dense<0.000000e+00> : vector<256xf32>
    %9 = vector.multi_reduction <add>, %8, %cst_9 [0] : vector<32x256xf32> to vector<256xf32>
    %10 = vector.shape_cast %9 : vector<256xf32> to vector<1x256xf32>
    %cst_10 = arith.constant 3.125000e-02 : f32
    %11 = vector.broadcast %cst_10 : f32 to vector<1x256xf32>
    %12 = arith.mulf %10, %11 : vector<1x256xf32>
    %13 = vector.broadcast %12 : vector<1x256xf32> to vector<32x256xf32>
    %14 = arith.subf %8, %13 : vector<32x256xf32>
    %15 = arith.mulf %14, %14 : vector<32x256xf32>
    %cst_11 = arith.constant dense<0.000000e+00> : vector<256xf32>
    %16 = vector.multi_reduction <add>, %15, %cst_11 [0] : vector<32x256xf32> to vector<256xf32>
    %17 = vector.shape_cast %16 : vector<256xf32> to vector<1x256xf32>
    %cst_12 = arith.constant 3.125000e-02 : f32
    %18 = vector.broadcast %cst_12 : f32 to vector<1x256xf32>
    %19 = arith.mulf %17, %18 : vector<1x256xf32>
    %cst_13 = arith.constant 9.99999974E-6 : f32
    %20 = vector.broadcast %cst_13 : f32 to vector<1x256xf32>
    %21 = arith.addf %19, %20 : vector<1x256xf32>
    %22 = math.rsqrt %21 : vector<1x256xf32>
    %23 = vector.broadcast %22 : vector<1x256xf32> to vector<32x256xf32>
    %24 = arith.mulf %14, %23 : vector<32x256xf32>
    %25 = vector.broadcast %5 : vector<32x1xf32> to vector<32x256xf32>
    %26 = arith.mulf %24, %25 : vector<32x256xf32>
    %27 = vector.broadcast %7 : vector<32x1xf32> to vector<32x256xf32>
    %28 = arith.addf %26, %27 : vector<32x256xf32>
    %c0_14 = arith.constant 0 : index
    %c0_15 = arith.constant 0 : index
    %c0_16 = arith.constant 0 : index
    %29 = vector.load %arg5[%c0_14, %c0_15, %c0_16] : memref<1x128x256xf32, #tpu.memory_space<vmem>>, vector<1x32x256xf32>
    %30 = vector.shape_cast %29 : vector<1x32x256xf32> to vector<32x256xf32>
    %31 = vector.shape_cast %28 : vector<32x256xf32> to vector<1x32x256xf32>
    tpu.vector_store %arg5[%c0_14, %c0_15, %c0_16], %31 {strides = array<i32>} : memref<1x128x256xf32, #tpu.memory_space<vmem>>, vector<1x32x256xf32>,
    %32 = vector.extract_strided_slice %3 {offsets = [32, 0], sizes = [32, 256], strides = [1, 1]} : vector<128x256xf32> to vector<32x256xf32>
    %cst_17 = arith.constant dense<0.000000e+00> : vector<256xf32>
    %33 = vector.multi_reduction <add>, %32, %cst_17 [0] : vector<32x256xf32> to vector<256xf32>
    %34 = vector.shape_cast %33 : vector<256xf32> to vector<1x256xf32>
    %cst_18 = arith.constant 3.125000e-02 : f32
    %35 = vector.broadcast %cst_18 : f32 to vector<1x256xf32>
    %36 = arith.mulf %34, %35 : vector<1x256xf32>
    %37 = vector.broadcast %36 : vector<1x256xf32> to vector<32x256xf32>
    %38 = arith.subf %32, %37 : vector<32x256xf32>
    %39 = arith.mulf %38, %38 : vector<32x256xf32>
    %cst_19 = arith.constant dense<0.000000e+00> : vector<256xf32>
    %40 = vector.multi_reduction <add>, %39, %cst_19 [0] : vector<32x256xf32> to vector<256xf32>
    %41 = vector.shape_cast %40 : vector<256xf32> to vector<1x256xf32>
    %cst_20 = arith.constant 3.125000e-02 : f32
    %42 = vector.broadcast %cst_20 : f32 to vector<1x256xf32>
    %43 = arith.mulf %41, %42 : vector<1x256xf32>
    %cst_21 = arith.constant 9.99999974E-6 : f32
    %44 = vector.broadcast %cst_21 : f32 to vector<1x256xf32>
    %45 = arith.addf %43, %44 : vector<1x256xf32>
    %46 = math.rsqrt %45 : vector<1x256xf32>
    %47 = vector.broadcast %46 : vector<1x256xf32> to vector<32x256xf32>
    %48 = arith.mulf %38, %47 : vector<32x256xf32>
    %49 = vector.broadcast %5 : vector<32x1xf32> to vector<32x256xf32>
    %50 = arith.mulf %48, %49 : vector<32x256xf32>
    %51 = vector.broadcast %7 : vector<32x1xf32> to vector<32x256xf32>
    %52 = arith.addf %50, %51 : vector<32x256xf32>
    %c0_22 = arith.constant 0 : index
    %c32 = arith.constant 32 : index
    %c0_23 = arith.constant 0 : index
    %53 = vector.load %arg5[%c0_22, %c32, %c0_23] : memref<1x128x256xf32, #tpu.memory_space<vmem>>, vector<1x32x256xf32>
    %54 = vector.shape_cast %53 : vector<1x32x256xf32> to vector<32x256xf32>
    %55 = vector.shape_cast %52 : vector<32x256xf32> to vector<1x32x256xf32>
    tpu.vector_store %arg5[%c0_22, %c32, %c0_23], %55 {strides = array<i32>} : memref<1x128x256xf32, #tpu.memory_space<vmem>>, vector<1x32x256xf32>,
    %56 = vector.extract_strided_slice %3 {offsets = [64, 0], sizes = [32, 256], strides = [1, 1]} : vector<128x256xf32> to vector<32x256xf32>
    %cst_24 = arith.constant dense<0.000000e+00> : vector<256xf32>
    %57 = vector.multi_reduction <add>, %56, %cst_24 [0] : vector<32x256xf32> to vector<256xf32>
    %58 = vector.shape_cast %57 : vector<256xf32> to vector<1x256xf32>
    %cst_25 = arith.constant 3.125000e-02 : f32
    %59 = vector.broadcast %cst_25 : f32 to vector<1x256xf32>
    %60 = arith.mulf %58, %59 : vector<1x256xf32>
    %61 = vector.broadcast %60 : vector<1x256xf32> to vector<32x256xf32>
    %62 = arith.subf %56, %61 : vector<32x256xf32>
    %63 = arith.mulf %62, %62 : vector<32x256xf32>
    %cst_26 = arith.constant dense<0.000000e+00> : vector<256xf32>
    %64 = vector.multi_reduction <add>, %63, %cst_26 [0] : vector<32x256xf32> to vector<256xf32>
    %65 = vector.shape_cast %64 : vector<256xf32> to vector<1x256xf32>
    %cst_27 = arith.constant 3.125000e-02 : f32
    %66 = vector.broadcast %cst_27 : f32 to vector<1x256xf32>
    %67 = arith.mulf %65, %66 : vector<1x256xf32>
    %cst_28 = arith.constant 9.99999974E-6 : f32
    %68 = vector.broadcast %cst_28 : f32 to vector<1x256xf32>
    %69 = arith.addf %67, %68 : vector<1x256xf32>
    %70 = math.rsqrt %69 : vector<1x256xf32>
    %71 = vector.broadcast %70 : vector<1x256xf32> to vector<32x256xf32>
    %72 = arith.mulf %62, %71 : vector<32x256xf32>
    %73 = vector.broadcast %5 : vector<32x1xf32> to vector<32x256xf32>
    %74 = arith.mulf %72, %73 : vector<32x256xf32>
    %75 = vector.broadcast %7 : vector<32x1xf32> to vector<32x256xf32>
    %76 = arith.addf %74, %75 : vector<32x256xf32>
    %c0_29 = arith.constant 0 : index
    %c64 = arith.constant 64 : index
    %c0_30 = arith.constant 0 : index
    %77 = vector.load %arg5[%c0_29, %c64, %c0_30] : memref<1x128x256xf32, #tpu.memory_space<vmem>>, vector<1x32x256xf32>
    %78 = vector.shape_cast %77 : vector<1x32x256xf32> to vector<32x256xf32>
    %79 = vector.shape_cast %76 : vector<32x256xf32> to vector<1x32x256xf32>
    tpu.vector_store %arg5[%c0_29, %c64, %c0_30], %79 {strides = array<i32>} : memref<1x128x256xf32, #tpu.memory_space<vmem>>, vector<1x32x256xf32>,
    %80 = vector.extract_strided_slice %3 {offsets = [96, 0], sizes = [32, 256], strides = [1, 1]} : vector<128x256xf32> to vector<32x256xf32>
    %cst_31 = arith.constant dense<0.000000e+00> : vector<256xf32>
    %81 = vector.multi_reduction <add>, %80, %cst_31 [0] : vector<32x256xf32> to vector<256xf32>
    %82 = vector.shape_cast %81 : vector<256xf32> to vector<1x256xf32>
    %cst_32 = arith.constant 3.125000e-02 : f32
    %83 = vector.broadcast %cst_32 : f32 to vector<1x256xf32>
    %84 = arith.mulf %82, %83 : vector<1x256xf32>
    %85 = vector.broadcast %84 : vector<1x256xf32> to vector<32x256xf32>
    %86 = arith.subf %80, %85 : vector<32x256xf32>
    %87 = arith.mulf %86, %86 : vector<32x256xf32>
    %cst_33 = arith.constant dense<0.000000e+00> : vector<256xf32>
    %88 = vector.multi_reduction <add>, %87, %cst_33 [0] : vector<32x256xf32> to vector<256xf32>
    %89 = vector.shape_cast %88 : vector<256xf32> to vector<1x256xf32>
    %cst_34 = arith.constant 3.125000e-02 : f32
    %90 = vector.broadcast %cst_34 : f32 to vector<1x256xf32>
    %91 = arith.mulf %89, %90 : vector<1x256xf32>
    %cst_35 = arith.constant 9.99999974E-6 : f32
    %92 = vector.broadcast %cst_35 : f32 to vector<1x256xf32>
    %93 = arith.addf %91, %92 : vector<1x256xf32>
    %94 = math.rsqrt %93 : vector<1x256xf32>
    %95 = vector.broadcast %94 : vector<1x256xf32> to vector<32x256xf32>
    %96 = arith.mulf %86, %95 : vector<32x256xf32>
    %97 = vector.broadcast %5 : vector<32x1xf32> to vector<32x256xf32>
    %98 = arith.mulf %96, %97 : vector<32x256xf32>
    %99 = vector.broadcast %7 : vector<32x1xf32> to vector<32x256xf32>
    %100 = arith.addf %98, %99 : vector<32x256xf32>
    %c0_36 = arith.constant 0 : index
    %c96 = arith.constant 96 : index
    %c0_37 = arith.constant 0 : index
    %101 = vector.load %arg5[%c0_36, %c96, %c0_37] : memref<1x128x256xf32, #tpu.memory_space<vmem>>, vector<1x32x256xf32>
    %102 = vector.shape_cast %101 : vector<1x32x256xf32> to vector<32x256xf32>
    %103 = vector.shape_cast %100 : vector<32x256xf32> to vector<1x32x256xf32>
    tpu.vector_store %arg5[%c0_36, %c96, %c0_37], %103 {strides = array<i32>} : memref<1x128x256xf32, #tpu.memory_space<vmem>>, vector<1x32x256xf32>,
    return
  }
  func.func @transform_0(%arg0: i32, %arg1: i32) -> (i32, i32, i32) {
    %c0_i32 = arith.constant 0 : i32
    %c0_i32_0 = arith.constant 0 : i32
    return %arg0, %c0_i32, %arg1 : i32, i32, i32
  }
  func.func @transform_1(%arg0: i32, %arg1: i32) -> (i32, i32) {
    %c0_i32 = arith.constant 0 : i32
    %c0_i32_0 = arith.constant 0 : i32
    %c0_i32_1 = arith.constant 0 : i32
    return %c0_i32, %c0_i32_0 : i32, i32
  }
  func.func @transform_2(%arg0: i32, %arg1: i32) -> (i32, i32, i32) {
    %c0_i32 = arith.constant 0 : i32
    %c0_i32_0 = arith.constant 0 : i32
    %c0_i32_1 = arith.constant 0 : i32
    %c0_i32_2 = arith.constant 0 : i32
    return %c0_i32, %c0_i32_0, %c0_i32_1 : i32, i32, i32
  }
  func.func @transform_3(%arg0: i32, %arg1: i32) -> (i32, i32, i32) {
    %c0_i32 = arith.constant 0 : i32
    %c0_i32_0 = arith.constant 0 : i32
    return %arg0, %c0_i32, %arg1 : i32, i32, i32
  }
}

</mosaic_0001>

<bundles_post_ra>
// kernel: tpu_custom_call.1
= control target key start
LH: loop header
LB: loop body
LE: loop exit
PB: predicated region body
PF: predicated region fallthrough
CT: control target
= control target key end

     0   :  { %8 = vsyncpa [#allocation3], 0  ;;  %s1853_s0 = inlined_call_operand.vmem [shape: f32[2,64,256], index: 0, kind: input, shape index: {}]   ;;  %s1854_s1 = inlined_call_operand.vmem [shape: f32[128,64], index: 1, kind: input, shape index: {}]   ;;  %s1855_s2 = inlined_call_operand.vmem [shape: f32[2,32,1], index: 2, kind: input, shape index: {}]   ;;  %s1856_s3 = inlined_call_operand.hbm [shape: f32[2,128,256], index: 3, kind: output, shape index: {}]  }
   0x1   :  { %10 = vsyncpa [#allocation3 + $0x1], 0  ;;  %s1195_s12 = smov 0   ;;  %s1197_s13 = smov 0  }
   0x2   :  { %s1199_s14 = smov 0   ;;  %s1201_s15 = smov 0  }
   0x3   :  { %s1203_s16 = smov 0   ;;  %s1205_s17 = smov 0  }
   0x4 LB: > { %s954_s18 = sadd.s32 4294967295, %s1168_s17   ;;  %s955_s19 = sadd.s32 4294967294, %s1168_s17   ;;  %s1168_s17 = sphi %s1205_s17, %s16_s17   ;;  %s1164_s16 = sphi %s1203_s16, %s1869_s16   ;;  %s1160_s15 = sphi %s1201_s15, %s1868_s15   ;;  %s1156_s14 = sphi %s1199_s14, %s1867_s14   ;;  %s1152_s13 = sphi %s1197_s13, %s1866_s13   ;;  %s1148_s12 = sphi %s1195_s12, %s1865_s12  }
   0x5   : > { %s28_s20 = sadd.s32 1, %s1164_s16  ;;  %s107_s21 = sadd.s32 1, %s1156_s14 }
   0x6   : > { %p30_p0 = scmp.ge.s32.totalorder %s28_s20, 2  ;;  %p117_p1 = scmp.ne.s32.totalorder %s1156_s14, %s1152_s13 }
   0x7   : > { %p118_p2 = scmp.eq.s32.totalorder %s954_s18, 1  ;;  %p123_p3 = scmp.ne.s32.totalorder %s1152_s13, %s1148_s12 }
   0x8   : > { %s1871_s20 = smov (%p30_p0, %s28_s20), 0  ;;  %p124_p5 = scmp.eq.s32.totalorder %s955_s19, 1 }
   0x9   : > { %p1235_p4 = por %p118_p2, %p117_p1  ;;  %s102_s23 = ssub.s32 %s1164_s16, %s1871_s20 }
   0xa   : > { %p958_p6 = scmp.ge.s32.totalorder %s1168_s17, 1  ;;  %p105_p7 = scmp.eq.s32.totalorder %s102_s23, 0 }
   0xb   : > { %p1242_p8 = por %p124_p5, %p123_p3  ;;  %p161_p9 = scmp.lt.s32.totalorder %s1168_s17, 3 }
   0xc   : > { %s1248_s25 = scalar_select %p105_p7, %s1156_s14, %s107_s21  }
   0xd   : > { %p162_p10 = pnand %p958_p6, %p161_p9 }
   0xf   : > { %165 = sbr.rel (%p162_p10) target bundleno = 385 (0x181), region = 32 }
  0x16   : > { %p190_p11 = scmp.lt.s32.totalorder %s1160_s15, 1  ;;  %v1170_v0 = vmov 0.0   ;;  %v1171_v1 = vmov 0   ;;  %v444_v2 = vld [vmem:[%s1855_s2 + $0x10] sm:$0xff]  ;;  %v442_v3 = vld [vmem:[%s1855_s2] sm:$0xff]  ;;  %v445_v21 = vld [vmem:[%s1855_s2 + $0x18] sm:$0xff] }
  0x17   : > { %345 = vmatprep.mubr.f32.mxu0 %v1170_v0  ;;  %393 = vmatprep.mubr.f32.mxu1 %v1170_v0  ;;  %v443_v22 = vld [vmem:[%s1855_s2 + $0x8] sm:$0xff]  ;;  %v978_v26 = vld [vmem:[%s1855_s2 + $0x20] sm:$0xff]  ;;  %v981_v31 = vld [vmem:[%s1855_s2 + $0x38] sm:$0xff]  ;;  %vm232_vm0 = vcmask 523264   ;;  %s186_s28 = sand.u32 1, %s1152_s13   ;;  %s988_s4 = sshll.u32 %s1160_s15, 12 }
  0x18   : > { %s191_s26 = scalar_select %p190_p11, %s1160_s15, 1  ;;  %1073 = vset.pattern.permute.xlu1 %v1171_v1  ;;  %1072 = vset.pattern.permute.xlu0 %v1171_v1  ;;  %v979_v25 = vld [vmem:[%s1855_s2 + $0x28] sm:$0xff]  ;;  %v980_v32 = vld [vmem:[%s1855_s2 + $0x30] sm:$0xff]  ;;  %v216_v34 = vld [vmem:[%s1854_s1] sm:$0xff] }
  0x19   : > { %531 = vperm.xlu1 %1073, %v444_v2   ;;  %521 = vperm.xlu0 %1072, %v442_v3   ;;  %v224_v35 = vld [vmem:[%s1854_s1 + $0x40] sm:$0xff]  ;;  %v217_v36 = vld [vmem:[%s1854_s1 + $0x8] sm:$0xff]  ;;  %v218_v38 = vld [vmem:[%s1854_s1 + $0x10] sm:$0xff]  ;;  %s959_s29 = sshll.u32 %s186_s28, 8  ;;  %s1793_s7 = scalar_lea.hbm %s1856_s3, %s988_s4 }
  0x1a   : > { %s987_s27 = sshll.u32 %s191_s26, 7  ;;  %v225_v37 = vld [vmem:[%s1854_s1 + $0x48] sm:$0xff]  ;;  %v226_v39 = vld [vmem:[%s1854_s1 + $0x50] sm:$0xff]  ;;  %v219_v40 = vld [vmem:[%s1854_s1 + $0x18] sm:$0xff]  ;;  %s1807_s8 = scalar_lea.sflag [#allocation3], %s186_s28 }
  0x1b   : > { %s1257_s30 = scalar_lea.vmem %s1853_s0, %s987_s27  ;;  %v227_v41 = vld [vmem:[%s1854_s1 + $0x58] sm:$0xff]  ;;  %v220_v42 = vld [vmem:[%s1854_s1 + $0x20] sm:$0xff]  ;;  %v221_v44 = vld [vmem:[%s1854_s1 + $0x28] sm:$0xff]  ;;  %s1172_s10 = smov [#allocation2]  }
  0x1c   : > { %v201_v4 = vld [vmem:[%s1257_s30 + $0x8] sm:$0xff]  ;;  %v203_v5 = vld [vmem:[%s1257_s30 + $0x18] sm:$0xff]  ;;  %v200_v6 = vld [vmem:[%s1257_s30] sm:$0xff]  ;;  %s1094_s11 = sshll.u32 %s1172_s10, 4  ;;  %s1095_s11 = int_to_ptr.vmem [resolvable:$false] %s1094_s11 }
  0x1d   : > { %v989_v7 = vpack.c.bf16 %v203_v5, %v201_v4  ;;  %v202_v8 = vld [vmem:[%s1257_s30 + $0x10] sm:$0xff]  ;;  %v205_v9 = vld [vmem:[%s1257_s30 + $0x28] sm:$0xff]  ;;  %v207_v10 = vld [vmem:[%s1257_s30 + $0x38] sm:$0xff]  ;;  %536 = vperm.xlu1 %1073, %v445_v21   ;;  %526 = vperm.xlu0 %1072, %v443_v22   ;;  %s1096_s18 = scalar_lea.vmem %s1095_s11, 8192 }
  0x1e   : > { %v991_v11 = vpack.c.bf16 %v202_v8, %v200_v6  ;;  %v993_v12 = vpack.c.bf16 %v207_v10, %v205_v9  ;;  %v204_v13 = vld [vmem:[%s1257_s30 + $0x20] sm:$0xff]  ;;  %v206_v14 = vld [vmem:[%s1257_s30 + $0x30] sm:$0xff]  ;;  %v209_v15 = vld [vmem:[%s1257_s30 + $0x48] sm:$0xff] }
  0x1f   : > { %990 = vmatprep.subr.bf16.mxu0 %v989_v7  ;;  %1005 = vmatprep.subr.bf16.mxu1 %v989_v7  ;;  %v211_v16 = vld [vmem:[%s1257_s30 + $0x58] sm:$0xff]  ;;  %v995_v17 = vpack.c.bf16 %v206_v14, %v204_v13  ;;  %v208_v18 = vld [vmem:[%s1257_s30 + $0x40] sm:$0xff]  ;;  %v210_v20 = vld [vmem:[%s1257_s30 + $0x50] sm:$0xff] }
  0x20   : > { %992 = vmatpush1.bf16.msra.mxu0 %v991_v11  ;;  %1009 = vmatpush1.bf16.msra.mxu1 %v991_v11  ;;  %v997_v19 = vpack.c.bf16 %v211_v16, %v209_v15  ;;  %v213_v23 = vld [vmem:[%s1257_s30 + $0x68] sm:$0xff]  ;;  %v215_v24 = vld [vmem:[%s1257_s30 + $0x78] sm:$0xff]  ;;  %v999_v27 = vpack.c.bf16 %v210_v20, %v208_v18  ;;  %v212_v29 = vld [vmem:[%s1257_s30 + $0x60] sm:$0xff] }
  0x21   : > { %994 = vmatprep.subr.bf16.mxu0 %v993_v12  ;;  %1006 = vmatprep.subr.bf16.mxu1 %v993_v12  ;;  %v1001_v28 = vpack.c.bf16 %v215_v24, %v213_v23  ;;  %v214_v30 = vld [vmem:[%s1257_s30 + $0x70] sm:$0xff]  ;;  %v228_v43 = vld [vmem:[%s1854_s1 + $0x60] sm:$0xff]  ;;  %v229_v45 = vld [vmem:[%s1854_s1 + $0x68] sm:$0xff]  ;;  %s1682_s30 = scalar_lea.vmem [#allocation2], %s959_s29 }
  0x22   : > { %554 = vperm.xlu1 %1073, %v979_v25   ;;  %549 = vperm.xlu0 %1072, %v978_v26   ;;  %v1003_v33 = vpack.c.bf16 %v214_v30, %v212_v29  ;;  %v222_v46 = vld [vmem:[%s1854_s1 + $0x30] sm:$0xff]  ;;  %v223_v48 = vld [vmem:[%s1854_s1 + $0x38] sm:$0xff]  ;;  %s875_s5 = sshll.u32 %s1682_s30, 4  ;;  %s1795_s5 = int_to_ptr.vmem [resolvable:$true] %s875_s5 }
  0x23   : > { %v230_v47 = vld [vmem:[%s1854_s1 + $0x70] sm:$0xff]  ;;  %v231_v49 = vld [vmem:[%s1854_s1 + $0x78] sm:$0xff]  ;;  %s1090_s9 = scalar_lea.vmem %s1795_s5, 4096  ;;  %p1097_p1 = scmp.lt.s32.totalorder %s1795_s5, %s1095_s11 }
  0x24   : > { %996 = vmatpush1.bf16.msra.mxu0 %v995_v17  ;;  %1010 = vmatpush1.bf16.msra.mxu1 %v995_v17  ;;  %p1091_p12 = scmp.ne.s32.totalorder %s1795_s5, %s1090_s9  ;;  %p1098_p2 = scmp.lt.s32.totalorder %s1096_s18, %s1090_s9 }
  0x25   : > { %998 = vmatprep.subr.bf16.mxu0 %v997_v19  ;;  %1007 = vmatprep.subr.bf16.mxu1 %v997_v19 }
  0x26   : > { %564 = vperm.xlu1 %1073, %v981_v31   ;;  %559 = vperm.xlu0 %1072, %v980_v32   ;;  %p1092_p13 = pnand %p1091_p12, %p1235_p4  ;;  %p1099_p3 = por %p1098_p2, %p1097_p1 }
  0x28   : > { %1000 = vmatpush1.bf16.msra.mxu0 %v999_v27  ;;  %1011 = vmatpush1.bf16.msra.mxu1 %v999_v27  ;;  %p1093_p0 = pneg %p1092_p13 }
  0x29   : > { %1002 = vmatprep.subr.bf16.mxu0 %v1001_v28  ;;  %1008 = vmatprep.subr.bf16.mxu1 %v1001_v28 }
  0x2a   : > { %p1100_p5 = pnand %p1099_p3, %p1093_p0 }
  0x2c   : > { %1004 = vmatpush1.bf16.msra.mxu0 %v1003_v33  ;;  %1012 = vmatpush1.bf16.msra.mxu1 %v1003_v33 }
  0x2f   : > { %962 = vmatmul.mubr.msk.f32.vlgmr.msra.gmra.mrb[0].mxu0 %vm232_vm0, %v216_v34  ;;  %970 = vmatmul.mubr.msk.f32.vlgmr.msra.gmra.mrb[0].mxu1 %vm232_vm0, %v224_v35 }
  0x30   : > { %351 = vmatprep.mubr.f32.mxu0 %v1170_v0  ;;  %399 = vmatprep.mubr.f32.mxu1 %v1170_v0 }
  0x33   : > { %963 = vmatmul.mubr.msk.f32.gmra.mrb[2].mxu0 %vm232_vm0, %v217_v36  ;;  %971 = vmatmul.mubr.msk.f32.gmra.mrb[2].mxu1 %vm232_vm0, %v225_v37 }
  0x34   : > { %357 = vmatprep.mubr.f32.mxu0 %v1170_v0  ;;  %405 = vmatprep.mubr.f32.mxu1 %v1170_v0 }
  0x37   : > { %964 = vmatmul.mubr.msk.f32.gmra.mrb[4].mxu0 %vm232_vm0, %v218_v38  ;;  %972 = vmatmul.mubr.msk.f32.gmra.mrb[4].mxu1 %vm232_vm0, %v226_v39 }
  0x38   : > { %363 = vmatprep.mubr.f32.mxu0 %v1170_v0  ;;  %411 = vmatprep.mubr.f32.mxu1 %v1170_v0 }
  0x3b   : > { %965 = vmatmul.mubr.msk.f32.gmra.mrb[6].mxu0 %vm232_vm0, %v219_v40  ;;  %973 = vmatmul.mubr.msk.f32.gmra.mrb[6].mxu1 %vm232_vm0, %v227_v41 }
  0x3c   : > { %369 = vmatprep.mubr.f32.mxu0 %v1170_v0  ;;  %417 = vmatprep.mubr.f32.mxu1 %v1170_v0 }
  0x3f   : > { %966 = vmatmul.mubr.msk.f32.gmra.mrb[8].mxu0 %vm232_vm0, %v220_v42  ;;  %974 = vmatmul.mubr.msk.f32.gmra.mrb[8].mxu1 %vm232_vm0, %v228_v43 }
  0x40   : > { %375 = vmatprep.mubr.f32.mxu0 %v1170_v0  ;;  %423 = vmatprep.mubr.f32.mxu1 %v1170_v0 }
  0x43   : > { %967 = vmatmul.mubr.msk.f32.gmra.mrb[10].mxu0 %vm232_vm0, %v221_v44  ;;  %975 = vmatmul.mubr.msk.f32.gmra.mrb[10].mxu1 %vm232_vm0, %v229_v45 }
  0x44   : > { %381 = vmatprep.mubr.f32.mxu0 %v1170_v0  ;;  %429 = vmatprep.mubr.f32.mxu1 %v1170_v0 }
  0x47   : > { %968 = vmatmul.mubr.msk.f32.gmra.mrb[12].mxu0 %vm232_vm0, %v222_v46  ;;  %976 = vmatmul.mubr.msk.f32.gmra.mrb[12].mxu1 %vm232_vm0, %v230_v47 }
  0x48   : > { %387 = vmatprep.mubr.f32.mxu0 %v1170_v0  ;;  %435 = vmatprep.mubr.f32.mxu1 %v1170_v0 }
  0x4b   : > { %969 = vmatmul.mubr.msk.f32.gmra.mrb[14].mxu0 %vm232_vm0, %v223_v48  ;;  %977 = vmatmul.mubr.msk.f32.gmra.mrb[14].mxu1 %vm232_vm0, %v231_v49 }
 0x102   : > { %v1377_v50 = vpop.f32.mrb[0].mxu0  ;;  %v1379_v51 = vpop.f32.mrb[0].mxu1 }
 0x103   : > { %v1381_v52 = vpop.f32.mrb[1].mxu0  ;;  %v1383_v53 = vpop.f32.mrb[1].mxu1 }
 0x106   : > { %v1385_v54 = vpop.f32.mrb[2].mxu0  ;;  %v1387_v55 = vpop.f32.mrb[2].mxu1 }
 0x107   : > { %v451_v56 = vadd.f32 %v1385_v54, %v1377_v50  ;;  %v675_v57 = vadd.f32 %v1387_v55, %v1379_v51  ;;  %v1393_v58 = vpop.f32.mrb[3].mxu0  ;;  %v1395_v59 = vpop.f32.mrb[3].mxu1 }
 0x108   : > { %v460_v60 = vadd.f32 %v1393_v58, %v1381_v52  ;;  %v684_v61 = vadd.f32 %v1395_v59, %v1383_v53 }
 0x10a   : > { %v1401_v62 = vpop.f32.mrb[4].mxu0  ;;  %v1403_v63 = vpop.f32.mrb[4].mxu1 }
 0x10b   : > { %v452_v0 = vadd.f32 %v451_v56, %v1401_v62  ;;  %v676_v1 = vadd.f32 %v675_v57, %v1403_v63  ;;  %v1407_v2 = vpop.f32.mrb[5].mxu0  ;;  %v1409_v3 = vpop.f32.mrb[5].mxu1 }
 0x10c   : > { %v461_v4 = vadd.f32 %v460_v60, %v1407_v2  ;;  %v685_v5 = vadd.f32 %v684_v61, %v1409_v3 }
 0x10e   : > { %v365_v6 = vpop.f32.mrb[6].mxu0  ;;  %v1413_v7 = vpop.f32.mrb[6].mxu1 }
 0x10f   : > { %v453_v8 = vadd.f32 %v452_v0, %v365_v6  ;;  %v677_v9 = vadd.f32 %v676_v1, %v1413_v7  ;;  %v1416_v10 = vpop.f32.mrb[7].mxu0  ;;  %v1418_v11 = vpop.f32.mrb[7].mxu1 }
 0x110   : > { %v462_v12 = vadd.f32 %v461_v4, %v1416_v10  ;;  %v686_v13 = vadd.f32 %v685_v5, %v1418_v11 }
 0x111   : > { %v454_v14 = vrot.slane %v453_v8, 4  ;;  %v678_v15 = vrot.slane %v677_v9, 4 }
 0x112   : > { %v463_v16 = vrot.slane %v462_v12, 4  ;;  %v687_v17 = vrot.slane %v686_v13, 4  ;;  %v1422_v18 = vpop.f32.mrb[8].mxu0  ;;  %v1424_v19 = vpop.f32.mrb[8].mxu1 }
 0x113   : > { %v455_v20 = vadd.f32 %v454_v14, %v453_v8  ;;  %v679_v21 = vadd.f32 %v678_v15, %v677_v9  ;;  %v1426_v22 = vpop.f32.mrb[9].mxu0  ;;  %v1428_v23 = vpop.f32.mrb[9].mxu1 }
 0x114   : > { %v464_v24 = vadd.f32 %v463_v16, %v462_v12  ;;  %v688_v25 = vadd.f32 %v687_v17, %v686_v13 }
 0x115   : > { %v456_v26 = vrot.slane %v455_v20, 2  ;;  %v680_v27 = vrot.slane %v679_v21, 2 }
 0x116   : > { %v465_v28 = vrot.slane %v464_v24, 2  ;;  %v689_v29 = vrot.slane %v688_v25, 2  ;;  %v1430_v30 = vpop.f32.mrb[10].mxu0  ;;  %v1432_v31 = vpop.f32.mrb[10].mxu1 }
 0x117   : > { %v457_v32 = vadd.f32 %v456_v26, %v455_v20  ;;  %v681_v33 = vadd.f32 %v680_v27, %v679_v21  ;;  %v583_v34 = vadd.f32 %v1430_v30, %v1422_v18  ;;  %v767_v35 = vadd.f32 %v1432_v31, %v1424_v19  ;;  %v1438_v36 = vpop.f32.mrb[11].mxu0  ;;  %v1440_v37 = vpop.f32.mrb[11].mxu1 }
 0x118   : > { %v466_v38 = vadd.f32 %v465_v28, %v464_v24  ;;  %v690_v39 = vadd.f32 %v689_v29, %v688_v25  ;;  %v592_v40 = vadd.f32 %v1438_v36, %v1426_v22  ;;  %v776_v41 = vadd.f32 %v1440_v37, %v1428_v23 }
 0x119   : > { %v458_v42 = vrot.slane %v457_v32, 1  ;;  %v682_v43 = vrot.slane %v681_v33, 1 }
 0x11a   : > { %v467_v44 = vrot.slane %v466_v38, 1  ;;  %v691_v45 = vrot.slane %v690_v39, 1  ;;  %v1446_v46 = vpop.f32.mrb[12].mxu0  ;;  %v1448_v47 = vpop.f32.mrb[12].mxu1 }
 0x11b   : > { %v459_v48 = vadd.f32 %v458_v42, %v457_v32  ;;  %v683_v49 = vadd.f32 %v682_v43, %v681_v33  ;;  %v584_v56 = vadd.f32 %v583_v34, %v1446_v46  ;;  %v768_v57 = vadd.f32 %v767_v35, %v1448_v47  ;;  %v1452_v60 = vpop.f32.mrb[13].mxu0  ;;  %v1454_v61 = vpop.f32.mrb[13].mxu1 }
 0x11c   : > { %v468_v0 = vadd.f32 %v467_v44, %v466_v38  ;;  %v692_v1 = vadd.f32 %v691_v45, %v690_v39  ;;  %v593_v4 = vadd.f32 %v592_v40, %v1452_v60  ;;  %v777_v5 = vadd.f32 %v776_v41, %v1454_v61 }
 0x11d   : > { %v469_v8 = vmul.f32 0.03125, %v459_v48  ;;  %v693_v9 = vmul.f32 0.03125, %v683_v49 }
 0x11e   : > { %v470_v12 = vmul.f32 0.03125, %v468_v0  ;;  %v694_v13 = vmul.f32 0.03125, %v692_v1  ;;  %v1458_v14 = vpop.f32.mrb[14].mxu0  ;;  %v1460_v15 = vpop.f32.mrb[14].mxu1 }
 0x11f   : > { %v1463_v16 = vsub.f32 %v1377_v50, %v469_v8  ;;  %v1466_v17 = vsub.f32 %v1385_v54, %v469_v8  ;;  %v1469_v20 = vsub.f32 %v1401_v62, %v469_v8  ;;  %v1471_v21 = vsub.f32 %v365_v6, %v469_v8  ;;  %v1473_v24 = vpop.f32.mrb[15].mxu0  ;;  %v1475_v25 = vpop.f32.mrb[15].mxu1 }
 0x120   : > { %v1478_v26 = vsub.f32 %v1379_v51, %v693_v9  ;;  %v1481_v27 = vsub.f32 %v1387_v55, %v693_v9  ;;  %v1484_v50 = vsub.f32 %v1403_v63, %v693_v9  ;;  %v1487_v54 = vsub.f32 %v1413_v7, %v693_v9 }
 0x121   : > { %v479_v62 = vmul.f32 %v1463_v16, %v1463_v16  ;;  %v481_v6 = vmul.f32 %v1466_v17, %v1466_v17  ;;  %v483_v28 = vmul.f32 %v1469_v20, %v1469_v20  ;;  %v485_v51 = vmul.f32 %v1471_v21, %v1471_v21 }
 0x122   : > { %v703_v55 = vmul.f32 %v1478_v26, %v1478_v26  ;;  %v705_v63 = vmul.f32 %v1481_v27, %v1481_v27  ;;  %v707_v7 = vmul.f32 %v1484_v50, %v1484_v50  ;;  %v709_v29 = vmul.f32 %v1487_v54, %v1487_v54 }
 0x123   : > { %v487_v32 = vadd.f32 %v481_v6, %v479_v62  ;;  %v1506_v33 = vsub.f32 %v1381_v52, %v470_v12  ;;  %v1509_v34 = vsub.f32 %v1393_v58, %v470_v12  ;;  %v1512_v35 = vsub.f32 %v1407_v2, %v470_v12 }
 0x124   : > { %v711_v38 = vadd.f32 %v705_v63, %v703_v55  ;;  %v1515_v39 = vsub.f32 %v1416_v10, %v470_v12  ;;  %v1518_v40 = vsub.f32 %v1383_v53, %v694_v13  ;;  %v1521_v41 = vsub.f32 %v1395_v59, %v694_v13 }
 0x125   : > { %v488_v42 = vadd.f32 %v487_v32, %v483_v28  ;;  %v480_v52 = vmul.f32 %v1506_v33, %v1506_v33  ;;  %v482_v58 = vmul.f32 %v1509_v34, %v1509_v34  ;;  %v484_v2 = vmul.f32 %v1512_v35, %v1512_v35 }
 0x126   : > { %v712_v43 = vadd.f32 %v711_v38, %v707_v7  ;;  %v486_v10 = vmul.f32 %v1515_v39, %v1515_v39  ;;  %v1532_v53 = vsub.f32 %v1409_v3, %v694_v13  ;;  %v1535_v59 = vsub.f32 %v1418_v11, %v694_v13 }
 0x127   : > { %v489_v44 = vadd.f32 %v488_v42, %v485_v51  ;;  %v496_v45 = vadd.f32 %v482_v58, %v480_v52  ;;  %v704_v48 = vmul.f32 %v1518_v40, %v1518_v40  ;;  %v706_v49 = vmul.f32 %v1521_v41, %v1521_v41 }
 0x128   : > { %1861 = vst [vmem:[#allocation5_spill] sm:$0xff] %v1532_v53  ;;  %1862 = vst [vmem:[#allocation6_spill] sm:$0xff] %v1535_v59  ;;  %v713_v0 = vadd.f32 %v712_v43, %v709_v29  ;;  %v708_v1 = vmul.f32 %v1532_v53, %v1532_v53  ;;  %v710_v8 = vmul.f32 %v1535_v59, %v1535_v59 }
 0x129   : > { %v585_v3 = vadd.f32 %v584_v56, %v1458_v14  ;;  %v490_v9 = vrot.slane %v489_v44, 4  ;;  %v497_v11 = vadd.f32 %v496_v45, %v484_v2  ;;  %v720_v12 = vadd.f32 %v706_v49, %v704_v48 }
 0x12a   : > { %v769_v13 = vadd.f32 %v768_v57, %v1460_v15  ;;  %v714_v62 = vrot.slane %v713_v0, 4  ;;  %v594_v28 = vadd.f32 %v593_v4, %v1473_v24  ;;  %v778_v51 = vadd.f32 %v777_v5, %v1475_v25 }
 0x12b   : > { %v586_v6 = vrot.slane %v585_v3, 4  ;;  %v491_v55 = vadd.f32 %v490_v9, %v489_v44  ;;  %v498_v63 = vadd.f32 %v497_v11, %v486_v10  ;;  %v721_v7 = vadd.f32 %v720_v12, %v708_v1 }
 0x12c   : > { %v770_v29 = vrot.slane %v769_v13, 4  ;;  %v715_v32 = vadd.f32 %v714_v62, %v713_v0  ;;  %v595_v42 = vrot.slane %v594_v28, 4  ;;  %v779_v52 = vrot.slane %v778_v51, 4 }
 0x12d   : > { %v587_v38 = vadd.f32 %v586_v6, %v585_v3  ;;  %v492_v56 = vrot.slane %v491_v55, 2  ;;  %v499_v58 = vrot.slane %v498_v63, 4  ;;  %v722_v2 = vadd.f32 %v721_v7, %v710_v8 }
 0x12e   : > { %v771_v43 = vadd.f32 %v770_v29, %v769_v13  ;;  %v716_v45 = vrot.slane %v715_v32, 2  ;;  %v596_v48 = vadd.f32 %v595_v42, %v594_v28  ;;  %v780_v49 = vadd.f32 %v779_v52, %v778_v51 }
 0x12f   : > { %v588_v57 = vrot.slane %v587_v38, 2  ;;  %v493_v59 = vadd.f32 %v492_v56, %v491_v55  ;;  %v500_v4 = vadd.f32 %v499_v58, %v498_v63  ;;  %v723_v53 = vrot.slane %v722_v2, 4 }
 0x130   : > { %v772_v5 = vrot.slane %v771_v43, 2  ;;  %v717_v44 = vadd.f32 %v716_v45, %v715_v32  ;;  %v597_v1 = vrot.slane %v596_v48, 2  ;;  %v781_v9 = vrot.slane %v780_v49, 2 }
 0x131   : > { %v589_v10 = vadd.f32 %v588_v57, %v587_v38  ;;  %v494_v0 = vrot.slane %v493_v59, 1  ;;  %v501_v3 = vrot.slane %v500_v4, 2  ;;  %v724_v11 = vadd.f32 %v723_v53, %v722_v2 }
 0x132   : > { %v773_v12 = vadd.f32 %v772_v5, %v771_v43  ;;  %v718_v62 = vrot.slane %v717_v44, 1  ;;  %v598_v8 = vadd.f32 %v597_v1, %v596_v48  ;;  %v782_v13 = vadd.f32 %v781_v9, %v780_v49 }
 0x133   : > { %v590_v6 = vrot.slane %v589_v10, 1  ;;  %v495_v7 = vadd.f32 %v494_v0, %v493_v59  ;;  %v502_v29 = vadd.f32 %v501_v3, %v500_v4  ;;  %v725_v28 = vrot.slane %v724_v11, 2 }
 0x134   : > { %v774_v51 = vrot.slane %v773_v12, 1  ;;  %v719_v55 = vadd.f32 %v718_v62, %v717_v44  ;;  %v599_v42 = vrot.slane %v598_v8, 1  ;;  %v783_v53 = vrot.slane %v782_v13, 1 }
 0x135   : > { %v591_v63 = vadd.f32 %v590_v6, %v589_v10  ;;  %v505_v52 = vmul.f32 0.03125, %v495_v7  ;;  %v503_v32 = vrot.slane %v502_v29, 1  ;;  %v726_v38 = vadd.f32 %v725_v28, %v724_v11 }
 0x136   : > { %v775_v56 = vadd.f32 %v774_v51, %v773_v12  ;;  %v729_v58 = vmul.f32 0.03125, %v719_v55  ;;  %v600_v57 = vadd.f32 %v599_v42, %v598_v8  ;;  %v784_v3 = vadd.f32 %v783_v53, %v782_v13 }
 0x137   : > { %v601_v45 = vmul.f32 0.03125, %v591_v63  ;;  %v507_v2 = vadd.f32 1e-05, %v505_v52  ;;  %v504_v43 = vadd.f32 %v503_v32, %v502_v29  ;;  %v727_v5 = vrot.slane %v726_v38, 1  ;;  %v1596_v63 = vpop.permute.xlu1 %531 }
 0x138   : > { %v785_v48 = vmul.f32 0.03125, %v775_v56  ;;  %v731_v49 = vadd.f32 1e-05, %v729_v58  ;;  %v602_v29 = vmul.f32 0.03125, %v600_v57 }
 0x139   : > { %v1550_v59 = vsub.f32 %v1422_v18, %v601_v45  ;;  %v1553_v4 = vsub.f32 %v1430_v30, %v601_v45  ;;  %v1556_v44 = vsub.f32 %v1446_v46, %v601_v45  ;;  %1074 = vrsqrt.f32 %v507_v2 }
 0x13a   : > { %v506_v10 = vmul.f32 0.03125, %v504_v43  ;;  %v728_v1 = vadd.f32 %v727_v5, %v726_v38  ;;  %v1559_v9 = vsub.f32 %v1458_v14, %v601_v45  ;;  %1076 = vrsqrt.f32 %v731_v49  ;;  %v1623_v49 = vpop.permute.xlu0 %521 }
 0x13b   : > { %v611_v0 = vmul.f32 %v1550_v59, %v1550_v59  ;;  %v613_v18 = vmul.f32 %v1553_v4, %v1553_v4  ;;  %v615_v46 = vmul.f32 %v1556_v44, %v1556_v44  ;;  %v1568_v12 = vsub.f32 %v1424_v19, %v785_v48 }
 0x13c   : > { %v508_v11 = vadd.f32 1e-05, %v506_v10  ;;  %v730_v30 = vmul.f32 0.03125, %v728_v1  ;;  %v1571_v14 = vsub.f32 %v1432_v31, %v785_v48  ;;  %v1574_v6 = vsub.f32 %v1448_v47, %v785_v48 }
 0x13d   : > { %v619_v62 = vadd.f32 %v613_v18, %v611_v0  ;;  %v1577_v8 = vsub.f32 %v1460_v15, %v785_v48  ;;  %v795_v7 = vmul.f32 %v1568_v12, %v1568_v12  ;;  %v617_v19 = vmul.f32 %v1559_v9, %v1559_v9 }
 0x13e   : > { %1078 = vrsqrt.f32 %v508_v11  ;;  %v732_v13 = vadd.f32 1e-05, %v730_v30  ;;  %v797_v31 = vmul.f32 %v1571_v14, %v1571_v14  ;;  %v799_v47 = vmul.f32 %v1574_v6, %v1574_v6 }
 0x13f   : > { %v620_v28 = vadd.f32 %v619_v62, %v615_v46  ;;  %v1588_v15 = vsub.f32 %v1426_v22, %v602_v29  ;;  %v1591_v51 = vsub.f32 %v1438_v36, %v602_v29  ;;  %v1594_v55 = vsub.f32 %v1452_v60, %v602_v29 }
 0x140   : > { %1080 = vrsqrt.f32 %v732_v13  ;;  %v803_v52 = vadd.f32 %v797_v31, %v795_v7  ;;  %v1599_v32 = vsub.f32 %v1473_v24, %v602_v29  ;;  %v786_v38 = vmul.f32 0.03125, %v784_v3 }
 0x141   : > { %v621_v42 = vadd.f32 %v620_v28, %v617_v19  ;;  %v801_v56 = vmul.f32 %v1577_v8, %v1577_v8  ;;  %v612_v22 = vmul.f32 %v1588_v15, %v1588_v15  ;;  %v614_v36 = vmul.f32 %v1591_v51, %v1591_v51 }
 0x142   : > { %v616_v60 = vmul.f32 %v1594_v55, %v1594_v55  ;;  %v804_v45 = vadd.f32 %v803_v52, %v799_v47  ;;  %v618_v57 = vmul.f32 %v1599_v32, %v1599_v32  ;;  %v1612_v24 = vsub.f32 %v1428_v23, %v786_v38 }
 0x143   : > { %v622_v58 = vrot.slane %v621_v42, 4  ;;  %v1075_v53 = vpop.eup %1074  ;;  %v628_v2 = vadd.f32 %v614_v36, %v612_v22  ;;  %v1615_v43 = vsub.f32 %v1440_v37, %v786_v38  ;;  %v1618_v5 = vsub.f32 %v1454_v61, %v786_v38 }
 0x144   : > { %v1621_v48 = vsub.f32 %v1475_v25, %v786_v38  ;;  %v1077_v10 = vpop.eup %1076  ;;  %v511_v1 = vmul.f32 %v1075_v53, %v1463_v16  ;;  %v513_v0 = vmul.f32 %v1075_v53, %v1466_v17  ;;  %v1628_v23 = vmul.f32 %v1075_v53, %v1469_v20  ;;  %v1641_v16 = vpop.permute.xlu1 %536 }
 0x145   : > { %v1631_v37 = vmul.f32 %v1075_v53, %v1471_v21  ;;  %v735_v61 = vmul.f32 %v1077_v10, %v1478_v26  ;;  %v737_v18 = vmul.f32 %v1077_v10, %v1481_v27  ;;  %v1636_v25 = vmul.f32 %v1077_v10, %v1484_v50 }
 0x146   : > { %v1639_v3 = vmul.f32 %v1077_v10, %v1487_v54  ;;  %v623_v17 = vadd.f32 %v622_v58, %v621_v42  ;;  %v805_v11 = vadd.f32 %v804_v45, %v801_v56  ;;  %v629_v20 = vadd.f32 %v628_v2, %v616_v60  ;;  %v1659_v42 = vpop.permute.xlu0 %526  ;;  %v1863_v56 = vld [vmem:[#allocation5_spill] sm:$0xff] }
 0x147   : > { %v796_v30 = vmul.f32 %v1612_v24, %v1612_v24  ;;  %v798_v26 = vmul.f32 %v1615_v43, %v1615_v43  ;;  %v800_v27 = vmul.f32 %v1618_v5, %v1618_v5  ;;  %v802_v50 = vmul.f32 %v1621_v48, %v1621_v48 }
 0x148   : > { %v1079_v21 = vpop.eup %1078  ;;  %v539_v54 = vmul.f32 %v1623_v49, %v511_v1  ;;  %v624_v19 = vrot.slane %v623_v17, 2  ;;  %v806_v28 = vrot.slane %v805_v11, 4  ;;  %v630_v31 = vadd.f32 %v629_v20, %v618_v57  ;;  %v1669_v58 = vpop.permute.xlu1 %554 }
 0x149   : > { %v512_v46 = vmul.f32 %v1079_v21, %v1506_v33  ;;  %v514_v62 = vmul.f32 %v1079_v21, %v1509_v34  ;;  %v1656_v13 = vmul.f32 %v1079_v21, %v1512_v35  ;;  %v518_v7 = vmul.f32 %v1079_v21, %v1515_v39  ;;  %v1864_v34 = vld [vmem:[#allocation6_spill] sm:$0xff] }
 0x14a   : > { %v1081_v29 = vpop.eup %1080  ;;  %v812_v47 = vadd.f32 %v798_v26, %v796_v30  ;;  %v625_v35 = vadd.f32 %v624_v19, %v623_v17  ;;  %v807_v39 = vadd.f32 %v806_v28, %v805_v11  ;;  %v631_v36 = vrot.slane %v630_v31, 4 }
 0x14b   : > { %v736_v52 = vmul.f32 %v1081_v29, %v1518_v40  ;;  %v738_v38 = vmul.f32 %v1081_v29, %v1521_v41  ;;  %v1664_v33 = vmul.f32 %v1081_v29, %v1863_v56  ;;  %v742_v22 = vmul.f32 %v1081_v29, %v1864_v34 }
 0x14c   : > { %v813_v60 = vadd.f32 %v812_v47, %v800_v27  ;;  %v540_v45 = vmul.f32 %v1623_v49, %v512_v46  ;;  %v743_v57 = vmul.f32 %v735_v61, %v1623_v49  ;;  %v541_v41 = vmul.f32 %v1659_v42, %v513_v0  ;;  %v1679_v46 = vpop.permute.xlu0 %549  ;;  %v1688_v47 = vpop.permute.xlu1 %564 }
 0x14d   : > { %v744_v40 = vmul.f32 %v736_v52, %v1623_v49  ;;  %v626_v53 = vrot.slane %v625_v35, 1  ;;  %v808_v2 = vrot.slane %v807_v39, 2  ;;  %v632_v10 = vadd.f32 %v631_v36, %v630_v31 }
 0x14e   : > { %v814_v1 = vadd.f32 %v813_v60, %v802_v50  ;;  %v542_v20 = vmul.f32 %v1659_v42, %v514_v62  ;;  %v745_v17 = vmul.f32 %v737_v18, %v1659_v42  ;;  %v746_v11 = vmul.f32 %v738_v38, %v1659_v42 }
 0x14f   : > { %v569_v30 = vadd.f32 %v1669_v58, %v541_v41  ;;  %v627_v21 = vadd.f32 %v626_v53, %v625_v35  ;;  %v809_v26 = vadd.f32 %v808_v2, %v807_v39  ;;  %v633_v27 = vrot.slane %v632_v10, 2 }
 0x150   : > { %v815_v61 = vrot.slane %v814_v1, 4  ;;  %v570_v0 = vadd.f32 %v1669_v58, %v542_v20  ;;  %v753_v18 = vadd.f32 %v745_v17, %v1669_v58  ;;  %v754_v50 = vadd.f32 %v746_v11, %v1669_v58  ;;  %v1707_v2 = vpop.permute.xlu0 %559 }
 0x151   : > { %577 = vst [vmem:[%s1682_s30 + $0x10] sm:$0xff] %v569_v30  ;;  %v567_v62 = vadd.f32 %v1679_v46, %v539_v54  ;;  %v637_v29 = vmul.f32 0.03125, %v627_v21  ;;  %v810_v19 = vrot.slane %v809_v26, 1  ;;  %v634_v28 = vadd.f32 %v633_v27, %v632_v10 }
 0x152   : > { %v816_v31 = vadd.f32 %v815_v61, %v814_v1  ;;  %578 = vst [vmem:[%s1682_s30 + $0x18] sm:$0xff] %v570_v0  ;;  %761 = vst [vmem:[%s1682_s30 + $0x90] sm:$0xff] %v753_v18  ;;  %v568_v52 = vadd.f32 %v1679_v46, %v540_v45  ;;  %v751_v38 = vadd.f32 %v743_v57, %v1679_v46 }
 0x153   : > { %762 = vst [vmem:[%s1682_s30 + $0x98] sm:$0xff] %v754_v50  ;;  %575 = vst [vmem:[%s1682_s30] sm:$0xff] %v567_v62  ;;  %v752_v56 = vadd.f32 %v744_v40, %v1679_v46  ;;  %v545_v54 = vmul.f32 %v1641_v16, %v1631_v37  ;;  %v639_v34 = vadd.f32 1e-05, %v637_v29  ;;  %v811_v35 = vadd.f32 %v810_v19, %v809_v26 }
 0x154   : > { %v635_v39 = vrot.slane %v634_v28, 1  ;;  %v817_v36 = vrot.slane %v816_v31, 2  ;;  %576 = vst [vmem:[%s1682_s30 + $0x8] sm:$0xff] %v568_v52  ;;  %759 = vst [vmem:[%s1682_s30 + $0x80] sm:$0xff] %v751_v38  ;;  %v546_v60 = vmul.f32 %v1641_v16, %v518_v7  ;;  %v749_v57 = vmul.f32 %v1639_v3, %v1641_v16 }
 0x155   : > { %760 = vst [vmem:[%s1682_s30 + $0x88] sm:$0xff] %v752_v56  ;;  %v573_v45 = vadd.f32 %v1688_v47, %v545_v54  ;;  %v750_v40 = vmul.f32 %v742_v22, %v1641_v16  ;;  %1082 = vrsqrt.f32 %v639_v34  ;;  %v821_v37 = vmul.f32 0.03125, %v811_v35 }
 0x156   : > { %v636_v41 = vadd.f32 %v635_v39, %v634_v28  ;;  %v818_v53 = vadd.f32 %v817_v36, %v816_v31  ;;  %v574_v10 = vadd.f32 %v1688_v47, %v546_v60  ;;  %v757_v7 = vadd.f32 %v749_v57, %v1688_v47 }
 0x157   : > { %581 = vst [vmem:[%s1682_s30 + $0x30] sm:$0xff] %v573_v45  ;;  %v758_v1 = vadd.f32 %v750_v40, %v1688_v47  ;;  %v543_v3 = vmul.f32 %v1596_v63, %v1628_v23  ;;  %v823_v22 = vadd.f32 1e-05, %v821_v37  ;;  %v544_v11 = vmul.f32 %v1596_v63, %v1656_v13 }
 0x158   : > { %v638_v20 = vmul.f32 0.03125, %v636_v41  ;;  %v819_v17 = vrot.slane %v818_v53, 1  ;;  %582 = vst [vmem:[%s1682_s30 + $0x38] sm:$0xff] %v574_v10  ;;  %765 = vst [vmem:[%s1682_s30 + $0xb0] sm:$0xff] %v757_v7  ;;  %v747_v21 = vmul.f32 %v1636_v25, %v1596_v63  ;;  %v748_v23 = vmul.f32 %v1664_v33, %v1596_v63 }
 0x159   : > { %766 = vst [vmem:[%s1682_s30 + $0xb8] sm:$0xff] %v758_v1  ;;  %v571_v30 = vadd.f32 %v1707_v2, %v543_v3  ;;  %1084 = vrsqrt.f32 %v823_v22  ;;  %v572_v61 = vadd.f32 %v1707_v2, %v544_v11 }
 0x15a   : > { %v640_v26 = vadd.f32 1e-05, %v638_v20  ;;  %v820_v27 = vadd.f32 %v819_v17, %v818_v53  ;;  %v755_v13 = vadd.f32 %v747_v21, %v1707_v2  ;;  %v756_v0 = vadd.f32 %v748_v23, %v1707_v2 }
 0x15b   : > { %579 = vst [vmem:[%s1682_s30 + $0x20] sm:$0xff] %v571_v30  ;;  %580 = vst [vmem:[%s1682_s30 + $0x28] sm:$0xff] %v572_v61 }
 0x15c   : > { %1086 = vrsqrt.f32 %v640_v26  ;;  %v822_v18 = vmul.f32 0.03125, %v820_v27  ;;  %763 = vst [vmem:[%s1682_s30 + $0xa0] sm:$0xff] %v755_v13  ;;  %764 = vst [vmem:[%s1682_s30 + $0xa8] sm:$0xff] %v756_v0 }
 0x15e   : > { %v824_v50 = vadd.f32 1e-05, %v822_v18 }
 0x15f   : > { %v1083_v25 = vpop.eup %1082 }
 0x160   : > { %1088 = vrsqrt.f32 %v824_v50  ;;  %v643_v33 = vmul.f32 %v1083_v25, %v1550_v59  ;;  %v645_v62 = vmul.f32 %v1083_v25, %v1553_v4  ;;  %v647_v29 = vmul.f32 %v1083_v25, %v1556_v44 }
 0x161   : > { %v649_v19 = vmul.f32 %v1083_v25, %v1559_v9 }
 0x162   : > { %v651_v28 = vmul.f32 %v643_v33, %v1623_v49  ;;  %v653_v31 = vmul.f32 %v645_v62, %v1659_v42  ;;  %v655_v38 = vmul.f32 %v647_v29, %v1596_v63 }
 0x163   : > { %v657_v52 = vmul.f32 %v649_v19, %v1641_v16  ;;  %v1085_v56 = vpop.eup %1084 }
 0x164   : > { %v827_v54 = vmul.f32 %v1085_v56, %v1568_v12  ;;  %v829_v59 = vmul.f32 %v1085_v56, %v1571_v14  ;;  %v831_v4 = vmul.f32 %v1085_v56, %v1574_v6  ;;  %v833_v44 = vmul.f32 %v1085_v56, %v1577_v8 }
 0x165   : > { %v661_v34 = vadd.f32 %v653_v31, %v1669_v58  ;;  %v659_v35 = vadd.f32 %v651_v28, %v1679_v46  ;;  %v665_v39 = vadd.f32 %v657_v52, %v1688_v47  ;;  %v663_v36 = vadd.f32 %v655_v38, %v1707_v2 }
 0x166   : > { %v1087_v9 = vpop.eup %1086  ;;  %v835_v8 = vmul.f32 %v827_v54, %v1623_v49  ;;  %v837_v45 = vmul.f32 %v829_v59, %v1659_v42  ;;  %v841_v57 = vmul.f32 %v833_v44, %v1641_v16 }
 0x167   : > { %v644_v12 = vmul.f32 %v1087_v9, %v1588_v15  ;;  %v646_v60 = vmul.f32 %v1087_v9, %v1591_v51  ;;  %v648_v14 = vmul.f32 %v1087_v9, %v1594_v55  ;;  %v650_v6 = vmul.f32 %v1087_v9, %v1599_v32  ;;  %669 = vst [vmem:[%s1682_s30 + $0x50] sm:$0xff] %v661_v34 }
 0x168   : > { %667 = vst [vmem:[%s1682_s30 + $0x40] sm:$0xff] %v659_v35  ;;  %673 = vst [vmem:[%s1682_s30 + $0x70] sm:$0xff] %v665_v39  ;;  %v839_v15 = vmul.f32 %v831_v4, %v1596_v63  ;;  %v845_v41 = vadd.f32 %v837_v45, %v1669_v58  ;;  %v843_v53 = vadd.f32 %v835_v8, %v1679_v46 }
 0x169   : > { %671 = vst [vmem:[%s1682_s30 + $0x60] sm:$0xff] %v663_v36  ;;  %v652_v51 = vmul.f32 %v644_v12, %v1623_v49  ;;  %v654_v55 = vmul.f32 %v646_v60, %v1659_v42  ;;  %v658_v32 = vmul.f32 %v650_v6, %v1641_v16  ;;  %v656_v40 = vmul.f32 %v648_v14, %v1596_v63 }
 0x16a   : > { %v1089_v37 = vpop.eup %1088  ;;  %v849_v10 = vadd.f32 %v841_v57, %v1688_v47  ;;  %v847_v7 = vadd.f32 %v839_v15, %v1707_v2  ;;  %853 = vst [vmem:[%s1682_s30 + $0xd0] sm:$0xff] %v845_v41  ;;  %851 = vst [vmem:[%s1682_s30 + $0xc0] sm:$0xff] %v843_v53 }
 0x16b   : > { %v828_v1 = vmul.f32 %v1089_v37, %v1612_v24  ;;  %v830_v3 = vmul.f32 %v1089_v37, %v1615_v43  ;;  %v832_v22 = vmul.f32 %v1089_v37, %v1618_v5  ;;  %v834_v20 = vmul.f32 %v1089_v37, %v1621_v48 }
 0x16c   : > { %v662_v17 = vadd.f32 %v654_v55, %v1669_v58  ;;  %v660_v11 = vadd.f32 %v652_v51, %v1679_v46  ;;  %v666_v24 = vadd.f32 %v658_v32, %v1688_v47  ;;  %857 = vst [vmem:[%s1682_s30 + $0xf0] sm:$0xff] %v849_v10  ;;  %v664_v43 = vadd.f32 %v656_v40, %v1707_v2 }
 0x16d   : > { %855 = vst [vmem:[%s1682_s30 + $0xe0] sm:$0xff] %v847_v7  ;;  %v836_v5 = vmul.f32 %v828_v1, %v1623_v49  ;;  %v838_v48 = vmul.f32 %v830_v3, %v1659_v42  ;;  %v842_v30 = vmul.f32 %v834_v20, %v1641_v16  ;;  %v840_v21 = vmul.f32 %v832_v22, %v1596_v63 }
 0x16e   : > { %670 = vst [vmem:[%s1682_s30 + $0x58] sm:$0xff] %v662_v17  ;;  %668 = vst [vmem:[%s1682_s30 + $0x48] sm:$0xff] %v660_v11 }
 0x16f   : > { %674 = vst [vmem:[%s1682_s30 + $0x78] sm:$0xff] %v666_v24  ;;  %672 = vst [vmem:[%s1682_s30 + $0x68] sm:$0xff] %v664_v43  ;;  %v846_v49 = vadd.f32 %v838_v48, %v1669_v58  ;;  %v844_v16 = vadd.f32 %v836_v5, %v1679_v46  ;;  %v850_v63 = vadd.f32 %v842_v30, %v1688_v47 }
 0x170   : > { %v848_v42 = vadd.f32 %v840_v21, %v1707_v2 }
 0x171   : > { %854 = vst [vmem:[%s1682_s30 + $0xd8] sm:$0xff] %v846_v49  ;;  %852 = vst [vmem:[%s1682_s30 + $0xc8] sm:$0xff] %v844_v16 }
 0x172   : > { %858 = vst [vmem:[%s1682_s30 + $0xf8] sm:$0xff] %v850_v63  ;;  %856 = vst [vmem:[%s1682_s30 + $0xe8] sm:$0xff] %v848_v42 }
 0x173   : > { %1103 = shalt.err (!%p1100_p5)
}
 0x174   : > { %s1104_s19 = scalar_lea.hbm %s1793_s7, 4096  ;;  %s1108_s26 = scalar_lea.hbm %s1856_s3, 8192 }
 0x175   : > { %p1105_p6 = scmp.ne.s32.totalorder %s1793_s7, %s1104_s19  ;;  %p1109_p10 = scmp.lt.u32.totalorder %s1793_s7, %s1856_s3 }
 0x176   : > { %p1110_p11 = scmp.lt.u32.totalorder %s1108_s26, %s1104_s19  ;;  %p1112_p13 = scmp.lt.u32.totalorder %s1104_s19, %s1793_s7 }
 0x177   : > { %p1106_p7 = pnand %p1105_p6, %p1235_p4 }
 0x178   : > { %p1111_p12 = por %p1110_p11, %p1109_p10 }
 0x179   : > { %p1107_p9 = pneg %p1106_p7 }
 0x17a   : > { %p1113_p0 = por %p1112_p13, %p1111_p12 }
 0x17c   : > { %p1114_p1 = pnand %p1113_p0, %p1107_p9 }
 0x17e   : > { %1117 = shalt.err (!%p1114_p1)
}
 0x17f   : > { %s1173_s29 = smov 256   ;;  %s1174_s30 = smov 16  }
 0x180   : > { %1013 = dma.vmem_to_hbm [thread:$0]  (%p1235_p4), %s1795_s5, 4096, %s1793_s7, %s1807_s8, %s1173_s29, %s1173_s29, %s1174_s30  }
 0x181 PF: > { %p1019_p2 = scmp.ge.s32.totalorder %s1168_s17, 2  ;;  %s890_s4 = sand.u32 1, %s1148_s12  }
 0x182   : > { %s891_s15 = scalar_lea.sflag [#allocation3], %s890_s4 }
 0x183   : > { %p1016_p3 = pnand %p1019_p2, %p1242_p8 }
 0x185   : > { %1143 = dma.done.wait (!%p1016_p3), %s891_s15, 4096  }
 0x186   : > { %1145 = vsyncadd (!%p1016_p3), %s891_s15, 4294963200  ;;  %s16_s17 = sadd.s32 1, %s1168_s17   ;;  %s1865_s12 = smov %s1152_s13 }
 0x187   : > { %p13_p5 = scmp.ge.s32.totalorder %s16_s17, 4   ;;  %s1866_s13 = smov %s1156_s14 }
 0x188   : > { %s1867_s14 = smov %s1248_s25  ;;  %s1868_s15 = smov %s1164_s16 }
 0x189   : > { %s1869_s16 = smov %s1871_s20  ;;  %15 = sbr.rel (!%p13_p5) target bundleno = 4 (0x4), region = 68 }
 0x190   :  { %896 = vsyncpa [#allocation3], 1 }
 0x191   :  { %898 = vsyncpa [#allocation3 + $0x1], 1 }

// kernel: tpu_custom_call.1
= control target key start
LH: loop header
LB: loop body
LE: loop exit
PB: predicated region body
PF: predicated region fallthrough
CT: control target
= control target key end

     0   :  { %8 = vsyncpa [#allocation3], 0  ;;  %s1853_s0 = inlined_call_operand.vmem [shape: f32[2,64,256], index: 0, kind: input, shape index: {}]   ;;  %s1854_s1 = inlined_call_operand.vmem [shape: f32[128,64], index: 1, kind: input, shape index: {}]   ;;  %s1855_s2 = inlined_call_operand.vmem [shape: f32[2,32,1], index: 2, kind: input, shape index: {}]   ;;  %s1856_s3 = inlined_call_operand.hbm [shape: f32[2,128,256], index: 3, kind: output, shape index: {}]  }
   0x1   :  { %10 = vsyncpa [#allocation3 + $0x1], 0  ;;  %s1195_s12 = smov 0   ;;  %s1197_s13 = smov 0  }
   0x2   :  { %s1199_s14 = smov 0   ;;  %s1201_s15 = smov 0  }
   0x3   :  { %s1203_s16 = smov 0   ;;  %s1205_s17 = smov 0  }
   0x4 LB: > { %s954_s18 = sadd.s32 4294967295, %s1168_s17   ;;  %s955_s19 = sadd.s32 4294967294, %s1168_s17   ;;  %s1168_s17 = sphi %s1205_s17, %s16_s17   ;;  %s1164_s16 = sphi %s1203_s16, %s1869_s16   ;;  %s1160_s15 = sphi %s1201_s15, %s1868_s15   ;;  %s1156_s14 = sphi %s1199_s14, %s1867_s14   ;;  %s1152_s13 = sphi %s1197_s13, %s1866_s13   ;;  %s1148_s12 = sphi %s1195_s12, %s1865_s12  }
   0x5   : > { %s28_s20 = sadd.s32 1, %s1164_s16  ;;  %s107_s21 = sadd.s32 1, %s1156_s14 }
   0x6   : > { %p30_p0 = scmp.ge.s32.totalorder %s28_s20, 2  ;;  %p117_p1 = scmp.ne.s32.totalorder %s1156_s14, %s1152_s13 }
   0x7   : > { %p118_p2 = scmp.eq.s32.totalorder %s954_s18, 1  ;;  %p123_p3 = scmp.ne.s32.totalorder %s1152_s13, %s1148_s12 }
   0x8   : > { %s1871_s20 = smov (%p30_p0, %s28_s20), 0  ;;  %p124_p5 = scmp.eq.s32.totalorder %s955_s19, 1 }
   0x9   : > { %p1235_p4 = por %p118_p2, %p117_p1  ;;  %s102_s23 = ssub.s32 %s1164_s16, %s1871_s20 }
   0xa   : > { %p958_p6 = scmp.ge.s32.totalorder %s1168_s17, 1  ;;  %p105_p7 = scmp.eq.s32.totalorder %s102_s23, 0 }
   0xb   : > { %p1242_p8 = por %p124_p5, %p123_p3  ;;  %p161_p9 = scmp.lt.s32.totalorder %s1168_s17, 3 }
   0xc   : > { %s1248_s25 = scalar_select %p105_p7, %s1156_s14, %s107_s21  }
   0xd   : > { %p162_p10 = pnand %p958_p6, %p161_p9 }
   0xf   : > { %165 = sbr.rel (%p162_p10) target bundleno = 385 (0x181), region = 32 }
  0x16   : > { %p190_p11 = scmp.lt.s32.totalorder %s1160_s15, 1  ;;  %v1170_v0 = vmov 0.0   ;;  %v1171_v1 = vmov 0   ;;  %v444_v2 = vld [vmem:[%s1855_s2 + $0x10] sm:$0xff]  ;;  %v442_v3 = vld [vmem:[%s1855_s2] sm:$0xff]  ;;  %v445_v21 = vld [vmem:[%s1855_s2 + $0x18] sm:$0xff] }
  0x17   : > { %345 = vmatprep.mubr.f32.mxu0 %v1170_v0  ;;  %393 = vmatprep.mubr.f32.mxu1 %v1170_v0  ;;  %v443_v22 = vld [vmem:[%s1855_s2 + $0x8] sm:$0xff]  ;;  %v978_v26 = vld [vmem:[%s1855_s2 + $0x20] sm:$0xff]  ;;  %v981_v31 = vld [vmem:[%s1855_s2 + $0x38] sm:$0xff]  ;;  %vm232_vm0 = vcmask 523264   ;;  %s186_s28 = sand.u32 1, %s1152_s13   ;;  %s988_s4 = sshll.u32 %s1160_s15, 12 }
  0x18   : > { %s191_s26 = scalar_select %p190_p11, %s1160_s15, 1  ;;  %1073 = vset.pattern.permute.xlu1 %v1171_v1  ;;  %1072 = vset.pattern.permute.xlu0 %v1171_v1  ;;  %v979_v25 = vld [vmem:[%s1855_s2 + $0x28] sm:$0xff]  ;;  %v980_v32 = vld [vmem:[%s1855_s2 + $0x30] sm:$0xff]  ;;  %v216_v34 = vld [vmem:[%s1854_s1] sm:$0xff] }
  0x19   : > { %531 = vperm.xlu1 %1073, %v444_v2   ;;  %521 = vperm.xlu0 %1072, %v442_v3   ;;  %v224_v35 = vld [vmem:[%s1854_s1 + $0x40] sm:$0xff]  ;;  %v217_v36 = vld [vmem:[%s1854_s1 + $0x8] sm:$0xff]  ;;  %v218_v38 = vld [vmem:[%s1854_s1 + $0x10] sm:$0xff]  ;;  %s959_s29 = sshll.u32 %s186_s28, 8  ;;  %s1793_s7 = scalar_lea.hbm %s1856_s3, %s988_s4 }
  0x1a   : > { %s987_s27 = sshll.u32 %s191_s26, 7  ;;  %v225_v37 = vld [vmem:[%s1854_s1 + $0x48] sm:$0xff]  ;;  %v226_v39 = vld [vmem:[%s1854_s1 + $0x50] sm:$0xff]  ;;  %v219_v40 = vld [vmem:[%s1854_s1 + $0x18] sm:$0xff]  ;;  %s1807_s8 = scalar_lea.sflag [#allocation3], %s186_s28 }
  0x1b   : > { %s1257_s30 = scalar_lea.vmem %s1853_s0, %s987_s27  ;;  %v227_v41 = vld [vmem:[%s1854_s1 + $0x58] sm:$0xff]  ;;  %v220_v42 = vld [vmem:[%s1854_s1 + $0x20] sm:$0xff]  ;;  %v221_v44 = vld [vmem:[%s1854_s1 + $0x28] sm:$0xff]  ;;  %s1172_s10 = smov [#allocation2]  }
  0x1c   : > { %v201_v4 = vld [vmem:[%s1257_s30 + $0x8] sm:$0xff]  ;;  %v203_v5 = vld [vmem:[%s1257_s30 + $0x18] sm:$0xff]  ;;  %v200_v6 = vld [vmem:[%s1257_s30] sm:$0xff]  ;;  %s1094_s11 = sshll.u32 %s1172_s10, 4  ;;  %s1095_s11 = int_to_ptr.vmem [resolvable:$false] %s1094_s11 }
  0x1d   : > { %v989_v7 = vpack.c.bf16 %v203_v5, %v201_v4  ;;  %v202_v8 = vld [vmem:[%s1257_s30 + $0x10] sm:$0xff]  ;;  %v205_v9 = vld [vmem:[%s1257_s30 + $0x28] sm:$0xff]  ;;  %v207_v10 = vld [vmem:[%s1257_s30 + $0x38] sm:$0xff]  ;;  %536 = vperm.xlu1 %1073, %v445_v21   ;;  %526 = vperm.xlu0 %1072, %v443_v22   ;;  %s1096_s18 = scalar_lea.vmem %s1095_s11, 8192 }
  0x1e   : > { %v991_v11 = vpack.c.bf16 %v202_v8, %v200_v6  ;;  %v993_v12 = vpack.c.bf16 %v207_v10, %v205_v9  ;;  %v204_v13 = vld [vmem:[%s1257_s30 + $0x20] sm:$0xff]  ;;  %v206_v14 = vld [vmem:[%s1257_s30 + $0x30] sm:$0xff]  ;;  %v209_v15 = vld [vmem:[%s1257_s30 + $0x48] sm:$0xff] }
  0x1f   : > { %990 = vmatprep.subr.bf16.mxu0 %v989_v7  ;;  %1005 = vmatprep.subr.bf16.mxu1 %v989_v7  ;;  %v211_v16 = vld [vmem:[%s1257_s30 + $0x58] sm:$0xff]  ;;  %v995_v17 = vpack.c.bf16 %v206_v14, %v204_v13  ;;  %v208_v18 = vld [vmem:[%s1257_s30 + $0x40] sm:$0xff]  ;;  %v210_v20 = vld [vmem:[%s1257_s30 + $0x50] sm:$0xff] }
  0x20   : > { %992 = vmatpush1.bf16.msra.mxu0 %v991_v11  ;;  %1009 = vmatpush1.bf16.msra.mxu1 %v991_v11  ;;  %v997_v19 = vpack.c.bf16 %v211_v16, %v209_v15  ;;  %v213_v23 = vld [vmem:[%s1257_s30 + $0x68] sm:$0xff]  ;;  %v215_v24 = vld [vmem:[%s1257_s30 + $0x78] sm:$0xff]  ;;  %v999_v27 = vpack.c.bf16 %v210_v20, %v208_v18  ;;  %v212_v29 = vld [vmem:[%s1257_s30 + $0x60] sm:$0xff] }
  0x21   : > { %994 = vmatprep.subr.bf16.mxu0 %v993_v12  ;;  %1006 = vmatprep.subr.bf16.mxu1 %v993_v12  ;;  %v1001_v28 = vpack.c.bf16 %v215_v24, %v213_v23  ;;  %v214_v30 = vld [vmem:[%s1257_s30 + $0x70] sm:$0xff]  ;;  %v228_v43 = vld [vmem:[%s1854_s1 + $0x60] sm:$0xff]  ;;  %v229_v45 = vld [vmem:[%s1854_s1 + $0x68] sm:$0xff]  ;;  %s1682_s30 = scalar_lea.vmem [#allocation2], %s959_s29 }
  0x22   : > { %554 = vperm.xlu1 %1073, %v979_v25   ;;  %549 = vperm.xlu0 %1072, %v978_v26   ;;  %v1003_v33 = vpack.c.bf16 %v214_v30, %v212_v29  ;;  %v222_v46 = vld [vmem:[%s1854_s1 + $0x30] sm:$0xff]  ;;  %v223_v48 = vld [vmem:[%s1854_s1 + $0x38] sm:$0xff]  ;;  %s875_s5 = sshll.u32 %s1682_s30, 4  ;;  %s1795_s5 = int_to_ptr.vmem [resolvable:$true] %s875_s5 }
  0x23   : > { %v230_v47 = vld [vmem:[%s1854_s1 + $0x70] sm:$0xff]  ;;  %v231_v49 = vld [vmem:[%s1854_s1 + $0x78] sm:$0xff]  ;;  %s1090_s9 = scalar_lea.vmem %s1795_s5, 4096  ;;  %p1097_p1 = scmp.lt.s32.totalorder %s1795_s5, %s1095_s11 }
  0x24   : > { %996 = vmatpush1.bf16.msra.mxu0 %v995_v17  ;;  %1010 = vmatpush1.bf16.msra.mxu1 %v995_v17  ;;  %p1091_p12 = scmp.ne.s32.totalorder %s1795_s5, %s1090_s9  ;;  %p1098_p2 = scmp.lt.s32.totalorder %s1096_s18, %s1090_s9 }
  0x25   : > { %998 = vmatprep.subr.bf16.mxu0 %v997_v19  ;;  %1007 = vmatprep.subr.bf16.mxu1 %v997_v19 }
  0x26   : > { %564 = vperm.xlu1 %1073, %v981_v31   ;;  %559 = vperm.xlu0 %1072, %v980_v32   ;;  %p1092_p13 = pnand %p1091_p12, %p1235_p4  ;;  %p1099_p3 = por %p1098_p2, %p1097_p1 }
  0x28   : > { %1000 = vmatpush1.bf16.msra.mxu0 %v999_v27  ;;  %1011 = vmatpush1.bf16.msra.mxu1 %v999_v27  ;;  %p1093_p0 = pneg %p1092_p13 }
  0x29   : > { %1002 = vmatprep.subr.bf16.mxu0 %v1001_v28  ;;  %1008 = vmatprep.subr.bf16.mxu1 %v1001_v28 }
  0x2a   : > { %p1100_p5 = pnand %p1099_p3, %p1093_p0 }
  0x2c   : > { %1004 = vmatpush1.bf16.msra.mxu0 %v1003_v33  ;;  %1012 = vmatpush1.bf16.msra.mxu1 %v1003_v33 }
  0x2f   : > { %962 = vmatmul.mubr.msk.f32.vlgmr.msra.gmra.mrb[0].mxu0 %vm232_vm0, %v216_v34  ;;  %970 = vmatmul.mubr.msk.f32.vlgmr.msra.gmra.mrb[0].mxu1 %vm232_vm0, %v224_v35 }
  0x30   : > { %351 = vmatprep.mubr.f32.mxu0 %v1170_v0  ;;  %399 = vmatprep.mubr.f32.mxu1 %v1170_v0 }
  0x33   : > { %963 = vmatmul.mubr.msk.f32.gmra.mrb[2].mxu0 %vm232_vm0, %v217_v36  ;;  %971 = vmatmul.mubr.msk.f32.gmra.mrb[2].mxu1 %vm232_vm0, %v225_v37 }
  0x34   : > { %357 = vmatprep.mubr.f32.mxu0 %v1170_v0  ;;  %405 = vmatprep.mubr.f32.mxu1 %v1170_v0 }
  0x37   : > { %964 = vmatmul.mubr.msk.f32.gmra.mrb[4].mxu0 %vm232_vm0, %v218_v38  ;;  %972 = vmatmul.mubr.msk.f32.gmra.mrb[4].mxu1 %vm232_vm0, %v226_v39 }
  0x38   : > { %363 = vmatprep.mubr.f32.mxu0 %v1170_v0  ;;  %411 = vmatprep.mubr.f32.mxu1 %v1170_v0 }
  0x3b   : > { %965 = vmatmul.mubr.msk.f32.gmra.mrb[6].mxu0 %vm232_vm0, %v219_v40  ;;  %973 = vmatmul.mubr.msk.f32.gmra.mrb[6].mxu1 %vm232_vm0, %v227_v41 }
  0x3c   : > { %369 = vmatprep.mubr.f32.mxu0 %v1170_v0  ;;  %417 = vmatprep.mubr.f32.mxu1 %v1170_v0 }
  0x3f   : > { %966 = vmatmul.mubr.msk.f32.gmra.mrb[8].mxu0 %vm232_vm0, %v220_v42  ;;  %974 = vmatmul.mubr.msk.f32.gmra.mrb[8].mxu1 %vm232_vm0, %v228_v43 }
  0x40   : > { %375 = vmatprep.mubr.f32.mxu0 %v1170_v0  ;;  %423 = vmatprep.mubr.f32.mxu1 %v1170_v0 }
  0x43   : > { %967 = vmatmul.mubr.msk.f32.gmra.mrb[10].mxu0 %vm232_vm0, %v221_v44  ;;  %975 = vmatmul.mubr.msk.f32.gmra.mrb[10].mxu1 %vm232_vm0, %v229_v45 }
  0x44   : > { %381 = vmatprep.mubr.f32.mxu0 %v1170_v0  ;;  %429 = vmatprep.mubr.f32.mxu1 %v1170_v0 }
  0x47   : > { %968 = vmatmul.mubr.msk.f32.gmra.mrb[12].mxu0 %vm232_vm0, %v222_v46  ;;  %976 = vmatmul.mubr.msk.f32.gmra.mrb[12].mxu1 %vm232_vm0, %v230_v47 }
  0x48   : > { %387 = vmatprep.mubr.f32.mxu0 %v1170_v0  ;;  %435 = vmatprep.mubr.f32.mxu1 %v1170_v0 }
  0x4b   : > { %969 = vmatmul.mubr.msk.f32.gmra.mrb[14].mxu0 %vm232_vm0, %v223_v48  ;;  %977 = vmatmul.mubr.msk.f32.gmra.mrb[14].mxu1 %vm232_vm0, %v231_v49 }
 0x102   : > { %v1377_v50 = vpop.f32.mrb[0].mxu0  ;;  %v1379_v51 = vpop.f32.mrb[0].mxu1 }
 0x103   : > { %v1381_v52 = vpop.f32.mrb[1].mxu0  ;;  %v1383_v53 = vpop.f32.mrb[1].mxu1 }
 0x106   : > { %v1385_v54 = vpop.f32.mrb[2].mxu0  ;;  %v1387_v55 = vpop.f32.mrb[2].mxu1 }
 0x107   : > { %v451_v56 = vadd.f32 %v1385_v54, %v1377_v50  ;;  %v675_v57 = vadd.f32 %v1387_v55, %v1379_v51  ;;  %v1393_v58 = vpop.f32.mrb[3].mxu0  ;;  %v1395_v59 = vpop.f32.mrb[3].mxu1 }
 0x108   : > { %v460_v60 = vadd.f32 %v1393_v58, %v1381_v52  ;;  %v684_v61 = vadd.f32 %v1395_v59, %v1383_v53 }
 0x10a   : > { %v1401_v62 = vpop.f32.mrb[4].mxu0  ;;  %v1403_v63 = vpop.f32.mrb[4].mxu1 }
 0x10b   : > { %v452_v0 = vadd.f32 %v451_v56, %v1401_v62  ;;  %v676_v1 = vadd.f32 %v675_v57, %v1403_v63  ;;  %v1407_v2 = vpop.f32.mrb[5].mxu0  ;;  %v1409_v3 = vpop.f32.mrb[5].mxu1 }
 0x10c   : > { %v461_v4 = vadd.f32 %v460_v60, %v1407_v2  ;;  %v685_v5 = vadd.f32 %v684_v61, %v1409_v3 }
 0x10e   : > { %v365_v6 = vpop.f32.mrb[6].mxu0  ;;  %v1413_v7 = vpop.f32.mrb[6].mxu1 }
 0x10f   : > { %v453_v8 = vadd.f32 %v452_v0, %v365_v6  ;;  %v677_v9 = vadd.f32 %v676_v1, %v1413_v7  ;;  %v1416_v10 = vpop.f32.mrb[7].mxu0  ;;  %v1418_v11 = vpop.f32.mrb[7].mxu1 }
 0x110   : > { %v462_v12 = vadd.f32 %v461_v4, %v1416_v10  ;;  %v686_v13 = vadd.f32 %v685_v5, %v1418_v11 }
 0x111   : > { %v454_v14 = vrot.slane %v453_v8, 4  ;;  %v678_v15 = vrot.slane %v677_v9, 4 }
 0x112   : > { %v463_v16 = vrot.slane %v462_v12, 4  ;;  %v687_v17 = vrot.slane %v686_v13, 4  ;;  %v1422_v18 = vpop.f32.mrb[8].mxu0  ;;  %v1424_v19 = vpop.f32.mrb[8].mxu1 }
 0x113   : > { %v455_v20 = vadd.f32 %v454_v14, %v453_v8  ;;  %v679_v21 = vadd.f32 %v678_v15, %v677_v9  ;;  %v1426_v22 = vpop.f32.mrb[9].mxu0  ;;  %v1428_v23 = vpop.f32.mrb[9].mxu1 }
 0x114   : > { %v464_v24 = vadd.f32 %v463_v16, %v462_v12  ;;  %v688_v25 = vadd.f32 %v687_v17, %v686_v13 }
 0x115   : > { %v456_v26 = vrot.slane %v455_v20, 2  ;;  %v680_v27 = vrot.slane %v679_v21, 2 }
 0x116   : > { %v465_v28 = vrot.slane %v464_v24, 2  ;;  %v689_v29 = vrot.slane %v688_v25, 2  ;;  %v1430_v30 = vpop.f32.mrb[10].mxu0  ;;  %v1432_v31 = vpop.f32.mrb[10].mxu1 }
 0x117   : > { %v457_v32 = vadd.f32 %v456_v26, %v455_v20  ;;  %v681_v33 = vadd.f32 %v680_v27, %v679_v21  ;;  %v583_v34 = vadd.f32 %v1430_v30, %v1422_v18  ;;  %v767_v35 = vadd.f32 %v1432_v31, %v1424_v19  ;;  %v1438_v36 = vpop.f32.mrb[11].mxu0  ;;  %v1440_v37 = vpop.f32.mrb[11].mxu1 }
 0x118   : > { %v466_v38 = vadd.f32 %v465_v28, %v464_v24  ;;  %v690_v39 = vadd.f32 %v689_v29, %v688_v25  ;;  %v592_v40 = vadd.f32 %v1438_v36, %v1426_v22  ;;  %v776_v41 = vadd.f32 %v1440_v37, %v1428_v23 }
 0x119   : > { %v458_v42 = vrot.slane %v457_v32, 1  ;;  %v682_v43 = vrot.slane %v681_v33, 1 }
 0x11a   : > { %v467_v44 = vrot.slane %v466_v38, 1  ;;  %v691_v45 = vrot.slane %v690_v39, 1  ;;  %v1446_v46 = vpop.f32.mrb[12].mxu0  ;;  %v1448_v47 = vpop.f32.mrb[12].mxu1 }
 0x11b   : > { %v459_v48 = vadd.f32 %v458_v42, %v457_v32  ;;  %v683_v49 = vadd.f32 %v682_v43, %v681_v33  ;;  %v584_v56 = vadd.f32 %v583_v34, %v1446_v46  ;;  %v768_v57 = vadd.f32 %v767_v35, %v1448_v47  ;;  %v1452_v60 = vpop.f32.mrb[13].mxu0  ;;  %v1454_v61 = vpop.f32.mrb[13].mxu1 }
 0x11c   : > { %v468_v0 = vadd.f32 %v467_v44, %v466_v38  ;;  %v692_v1 = vadd.f32 %v691_v45, %v690_v39  ;;  %v593_v4 = vadd.f32 %v592_v40, %v1452_v60  ;;  %v777_v5 = vadd.f32 %v776_v41, %v1454_v61 }
 0x11d   : > { %v469_v8 = vmul.f32 0.03125, %v459_v48  ;;  %v693_v9 = vmul.f32 0.03125, %v683_v49 }
 0x11e   : > { %v470_v12 = vmul.f32 0.03125, %v468_v0  ;;  %v694_v13 = vmul.f32 0.03125, %v692_v1  ;;  %v1458_v14 = vpop.f32.mrb[14].mxu0  ;;  %v1460_v15 = vpop.f32.mrb[14].mxu1 }
 0x11f   : > { %v1463_v16 = vsub.f32 %v1377_v50, %v469_v8  ;;  %v1466_v17 = vsub.f32 %v1385_v54, %v469_v8  ;;  %v1469_v20 = vsub.f32 %v1401_v62, %v469_v8  ;;  %v1471_v21 = vsub.f32 %v365_v6, %v469_v8  ;;  %v1473_v24 = vpop.f32.mrb[15].mxu0  ;;  %v1475_v25 = vpop.f32.mrb[15].mxu1 }
 0x120   : > { %v1478_v26 = vsub.f32 %v1379_v51, %v693_v9  ;;  %v1481_v27 = vsub.f32 %v1387_v55, %v693_v9  ;;  %v1484_v50 = vsub.f32 %v1403_v63, %v693_v9  ;;  %v1487_v54 = vsub.f32 %v1413_v7, %v693_v9 }
 0x121   : > { %v479_v62 = vmul.f32 %v1463_v16, %v1463_v16  ;;  %v481_v6 = vmul.f32 %v1466_v17, %v1466_v17  ;;  %v483_v28 = vmul.f32 %v1469_v20, %v1469_v20  ;;  %v485_v51 = vmul.f32 %v1471_v21, %v1471_v21 }
 0x122   : > { %v703_v55 = vmul.f32 %v1478_v26, %v1478_v26  ;;  %v705_v63 = vmul.f32 %v1481_v27, %v1481_v27  ;;  %v707_v7 = vmul.f32 %v1484_v50, %v1484_v50  ;;  %v709_v29 = vmul.f32 %v1487_v54, %v1487_v54 }
 0x123   : > { %v487_v32 = vadd.f32 %v481_v6, %v479_v62  ;;  %v1506_v33 = vsub.f32 %v1381_v52, %v470_v12  ;;  %v1509_v34 = vsub.f32 %v1393_v58, %v470_v12  ;;  %v1512_v35 = vsub.f32 %v1407_v2, %v470_v12 }
 0x124   : > { %v711_v38 = vadd.f32 %v705_v63, %v703_v55  ;;  %v1515_v39 = vsub.f32 %v1416_v10, %v470_v12  ;;  %v1518_v40 = vsub.f32 %v1383_v53, %v694_v13  ;;  %v1521_v41 = vsub.f32 %v1395_v59, %v694_v13 }
 0x125   : > { %v488_v42 = vadd.f32 %v487_v32, %v483_v28  ;;  %v480_v52 = vmul.f32 %v1506_v33, %v1506_v33  ;;  %v482_v58 = vmul.f32 %v1509_v34, %v1509_v34  ;;  %v484_v2 = vmul.f32 %v1512_v35, %v1512_v35 }
 0x126   : > { %v712_v43 = vadd.f32 %v711_v38, %v707_v7  ;;  %v486_v10 = vmul.f32 %v1515_v39, %v1515_v39  ;;  %v1532_v53 = vsub.f32 %v1409_v3, %v694_v13  ;;  %v1535_v59 = vsub.f32 %v1418_v11, %v694_v13 }
 0x127   : > { %v489_v44 = vadd.f32 %v488_v42, %v485_v51  ;;  %v496_v45 = vadd.f32 %v482_v58, %v480_v52  ;;  %v704_v48 = vmul.f32 %v1518_v40, %v1518_v40  ;;  %v706_v49 = vmul.f32 %v1521_v41, %v1521_v41 }
 0x128   : > { %1861 = vst [vmem:[#allocation5_spill] sm:$0xff] %v1532_v53  ;;  %1862 = vst [vmem:[#allocation6_spill] sm:$0xff] %v1535_v59  ;;  %v713_v0 = vadd.f32 %v712_v43, %v709_v29  ;;  %v708_v1 = vmul.f32 %v1532_v53, %v1532_v53  ;;  %v710_v8 = vmul.f32 %v1535_v59, %v1535_v59 }
 0x129   : > { %v585_v3 = vadd.f32 %v584_v56, %v1458_v14  ;;  %v490_v9 = vrot.slane %v489_v44, 4  ;;  %v497_v11 = vadd.f32 %v496_v45, %v484_v2  ;;  %v720_v12 = vadd.f32 %v706_v49, %v704_v48 }
 0x12a   : > { %v769_v13 = vadd.f32 %v768_v57, %v1460_v15  ;;  %v714_v62 = vrot.slane %v713_v0, 4  ;;  %v594_v28 = vadd.f32 %v593_v4, %v1473_v24  ;;  %v778_v51 = vadd.f32 %v777_v5, %v1475_v25 }
 0x12b   : > { %v586_v6 = vrot.slane %v585_v3, 4  ;;  %v491_v55 = vadd.f32 %v490_v9, %v489_v44  ;;  %v498_v63 = vadd.f32 %v497_v11, %v486_v10  ;;  %v721_v7 = vadd.f32 %v720_v12, %v708_v1 }
 0x12c   : > { %v770_v29 = vrot.slane %v769_v13, 4  ;;  %v715_v32 = vadd.f32 %v714_v62, %v713_v0  ;;  %v595_v42 = vrot.slane %v594_v28, 4  ;;  %v779_v52 = vrot.slane %v778_v51, 4 }
 0x12d   : > { %v587_v38 = vadd.f32 %v586_v6, %v585_v3  ;;  %v492_v56 = vrot.slane %v491_v55, 2  ;;  %v499_v58 = vrot.slane %v498_v63, 4  ;;  %v722_v2 = vadd.f32 %v721_v7, %v710_v8 }
 0x12e   : > { %v771_v43 = vadd.f32 %v770_v29, %v769_v13  ;;  %v716_v45 = vrot.slane %v715_v32, 2  ;;  %v596_v48 = vadd.f32 %v595_v42, %v594_v28  ;;  %v780_v49 = vadd.f32 %v779_v52, %v778_v51 }
 0x12f   : > { %v588_v57 = vrot.slane %v587_v38, 2  ;;  %v493_v59 = vadd.f32 %v492_v56, %v491_v55  ;;  %v500_v4 = vadd.f32 %v499_v58, %v498_v63  ;;  %v723_v53 = vrot.slane %v722_v2, 4 }
 0x130   : > { %v772_v5 = vrot.slane %v771_v43, 2  ;;  %v717_v44 = vadd.f32 %v716_v45, %v715_v32  ;;  %v597_v1 = vrot.slane %v596_v48, 2  ;;  %v781_v9 = vrot.slane %v780_v49, 2 }
 0x131   : > { %v589_v10 = vadd.f32 %v588_v57, %v587_v38  ;;  %v494_v0 = vrot.slane %v493_v59, 1  ;;  %v501_v3 = vrot.slane %v500_v4, 2  ;;  %v724_v11 = vadd.f32 %v723_v53, %v722_v2 }
 0x132   : > { %v773_v12 = vadd.f32 %v772_v5, %v771_v43  ;;  %v718_v62 = vrot.slane %v717_v44, 1  ;;  %v598_v8 = vadd.f32 %v597_v1, %v596_v48  ;;  %v782_v13 = vadd.f32 %v781_v9, %v780_v49 }
 0x133   : > { %v590_v6 = vrot.slane %v589_v10, 1  ;;  %v495_v7 = vadd.f32 %v494_v0, %v493_v59  ;;  %v502_v29 = vadd.f32 %v501_v3, %v500_v4  ;;  %v725_v28 = vrot.slane %v724_v11, 2 }
 0x134   : > { %v774_v51 = vrot.slane %v773_v12, 1  ;;  %v719_v55 = vadd.f32 %v718_v62, %v717_v44  ;;  %v599_v42 = vrot.slane %v598_v8, 1  ;;  %v783_v53 = vrot.slane %v782_v13, 1 }
 0x135   : > { %v591_v63 = vadd.f32 %v590_v6, %v589_v10  ;;  %v505_v52 = vmul.f32 0.03125, %v495_v7  ;;  %v503_v32 = vrot.slane %v502_v29, 1  ;;  %v726_v38 = vadd.f32 %v725_v28, %v724_v11 }
 0x136   : > { %v775_v56 = vadd.f32 %v774_v51, %v773_v12  ;;  %v729_v58 = vmul.f32 0.03125, %v719_v55  ;;  %v600_v57 = vadd.f32 %v599_v42, %v598_v8  ;;  %v784_v3 = vadd.f32 %v783_v53, %v782_v13 }
 0x137   : > { %v601_v45 = vmul.f32 0.03125, %v591_v63  ;;  %v507_v2 = vadd.f32 1e-05, %v505_v52  ;;  %v504_v43 = vadd.f32 %v503_v32, %v502_v29  ;;  %v727_v5 = vrot.slane %v726_v38, 1  ;;  %v1596_v63 = vpop.permute.xlu1 %531 }
 0x138   : > { %v785_v48 = vmul.f32 0.03125, %v775_v56  ;;  %v731_v49 = vadd.f32 1e-05, %v729_v58  ;;  %v602_v29 = vmul.f32 0.03125, %v600_v57 }
 0x139   : > { %v1550_v59 = vsub.f32 %v1422_v18, %v601_v45  ;;  %v1553_v4 = vsub.f32 %v1430_v30, %v601_v45  ;;  %v1556_v44 = vsub.f32 %v1446_v46, %v601_v45  ;;  %1074 = vrsqrt.f32 %v507_v2 }
 0x13a   : > { %v506_v10 = vmul.f32 0.03125, %v504_v43  ;;  %v728_v1 = vadd.f32 %v727_v5, %v726_v38  ;;  %v1559_v9 = vsub.f32 %v1458_v14, %v601_v45  ;;  %1076 = vrsqrt.f32 %v731_v49  ;;  %v1623_v49 = vpop.permute.xlu0 %521 }
 0x13b   : > { %v611_v0 = vmul.f32 %v1550_v59, %v1550_v59  ;;  %v613_v18 = vmul.f32 %v1553_v4, %v1553_v4  ;;  %v615_v46 = vmul.f32 %v1556_v44, %v1556_v44  ;;  %v1568_v12 = vsub.f32 %v1424_v19, %v785_v48 }
 0x13c   : > { %v508_v11 = vadd.f32 1e-05, %v506_v10  ;;  %v730_v30 = vmul.f32 0.03125, %v728_v1  ;;  %v1571_v14 = vsub.f32 %v1432_v31, %v785_v48  ;;  %v1574_v6 = vsub.f32 %v1448_v47, %v785_v48 }
 0x13d   : > { %v619_v62 = vadd.f32 %v613_v18, %v611_v0  ;;  %v1577_v8 = vsub.f32 %v1460_v15, %v785_v48  ;;  %v795_v7 = vmul.f32 %v1568_v12, %v1568_v12  ;;  %v617_v19 = vmul.f32 %v1559_v9, %v1559_v9 }
 0x13e   : > { %1078 = vrsqrt.f32 %v508_v11  ;;  %v732_v13 = vadd.f32 1e-05, %v730_v30  ;;  %v797_v31 = vmul.f32 %v1571_v14, %v1571_v14  ;;  %v799_v47 = vmul.f32 %v1574_v6, %v1574_v6 }
 0x13f   : > { %v620_v28 = vadd.f32 %v619_v62, %v615_v46  ;;  %v1588_v15 = vsub.f32 %v1426_v22, %v602_v29  ;;  %v1591_v51 = vsub.f32 %v1438_v36, %v602_v29  ;;  %v1594_v55 = vsub.f32 %v1452_v60, %v602_v29 }
 0x140   : > { %1080 = vrsqrt.f32 %v732_v13  ;;  %v803_v52 = vadd.f32 %v797_v31, %v795_v7  ;;  %v1599_v32 = vsub.f32 %v1473_v24, %v602_v29  ;;  %v786_v38 = vmul.f32 0.03125, %v784_v3 }
 0x141   : > { %v621_v42 = vadd.f32 %v620_v28, %v617_v19  ;;  %v801_v56 = vmul.f32 %v1577_v8, %v1577_v8  ;;  %v612_v22 = vmul.f32 %v1588_v15, %v1588_v15  ;;  %v614_v36 = vmul.f32 %v1591_v51, %v1591_v51 }
 0x142   : > { %v616_v60 = vmul.f32 %v1594_v55, %v1594_v55  ;;  %v804_v45 = vadd.f32 %v803_v52, %v799_v47  ;;  %v618_v57 = vmul.f32 %v1599_v32, %v1599_v32  ;;  %v1612_v24 = vsub.f32 %v1428_v23, %v786_v38 }
 0x143   : > { %v622_v58 = vrot.slane %v621_v42, 4  ;;  %v1075_v53 = vpop.eup %1074  ;;  %v628_v2 = vadd.f32 %v614_v36, %v612_v22  ;;  %v1615_v43 = vsub.f32 %v1440_v37, %v786_v38  ;;  %v1618_v5 = vsub.f32 %v1454_v61, %v786_v38 }
 0x144   : > { %v1621_v48 = vsub.f32 %v1475_v25, %v786_v38  ;;  %v1077_v10 = vpop.eup %1076  ;;  %v511_v1 = vmul.f32 %v1075_v53, %v1463_v16  ;;  %v513_v0 = vmul.f32 %v1075_v53, %v1466_v17  ;;  %v1628_v23 = vmul.f32 %v1075_v53, %v1469_v20  ;;  %v1641_v16 = vpop.permute.xlu1 %536 }
 0x145   : > { %v1631_v37 = vmul.f32 %v1075_v53, %v1471_v21  ;;  %v735_v61 = vmul.f32 %v1077_v10, %v1478_v26  ;;  %v737_v18 = vmul.f32 %v1077_v10, %v1481_v27  ;;  %v1636_v25 = vmul.f32 %v1077_v10, %v1484_v50 }
 0x146   : > { %v1639_v3 = vmul.f32 %v1077_v10, %v1487_v54  ;;  %v623_v17 = vadd.f32 %v622_v58, %v621_v42  ;;  %v805_v11 = vadd.f32 %v804_v45, %v801_v56  ;;  %v629_v20 = vadd.f32 %v628_v2, %v616_v60  ;;  %v1659_v42 = vpop.permute.xlu0 %526  ;;  %v1863_v56 = vld [vmem:[#allocation5_spill] sm:$0xff] }
 0x147   : > { %v796_v30 = vmul.f32 %v1612_v24, %v1612_v24  ;;  %v798_v26 = vmul.f32 %v1615_v43, %v1615_v43  ;;  %v800_v27 = vmul.f32 %v1618_v5, %v1618_v5  ;;  %v802_v50 = vmul.f32 %v1621_v48, %v1621_v48 }
 0x148   : > { %v1079_v21 = vpop.eup %1078  ;;  %v539_v54 = vmul.f32 %v1623_v49, %v511_v1  ;;  %v624_v19 = vrot.slane %v623_v17, 2  ;;  %v806_v28 = vrot.slane %v805_v11, 4  ;;  %v630_v31 = vadd.f32 %v629_v20, %v618_v57  ;;  %v1669_v58 = vpop.permute.xlu1 %554 }
 0x149   : > { %v512_v46 = vmul.f32 %v1079_v21, %v1506_v33  ;;  %v514_v62 = vmul.f32 %v1079_v21, %v1509_v34  ;;  %v1656_v13 = vmul.f32 %v1079_v21, %v1512_v35  ;;  %v518_v7 = vmul.f32 %v1079_v21, %v1515_v39  ;;  %v1864_v34 = vld [vmem:[#allocation6_spill] sm:$0xff] }
 0x14a   : > { %v1081_v29 = vpop.eup %1080  ;;  %v812_v47 = vadd.f32 %v798_v26, %v796_v30  ;;  %v625_v35 = vadd.f32 %v624_v19, %v623_v17  ;;  %v807_v39 = vadd.f32 %v806_v28, %v805_v11  ;;  %v631_v36 = vrot.slane %v630_v31, 4 }
 0x14b   : > { %v736_v52 = vmul.f32 %v1081_v29, %v1518_v40  ;;  %v738_v38 = vmul.f32 %v1081_v29, %v1521_v41  ;;  %v1664_v33 = vmul.f32 %v1081_v29, %v1863_v56  ;;  %v742_v22 = vmul.f32 %v1081_v29, %v1864_v34 }
 0x14c   : > { %v813_v60 = vadd.f32 %v812_v47, %v800_v27  ;;  %v540_v45 = vmul.f32 %v1623_v49, %v512_v46  ;;  %v743_v57 = vmul.f32 %v735_v61, %v1623_v49  ;;  %v541_v41 = vmul.f32 %v1659_v42, %v513_v0  ;;  %v1679_v46 = vpop.permute.xlu0 %549  ;;  %v1688_v47 = vpop.permute.xlu1 %564 }
 0x14d   : > { %v744_v40 = vmul.f32 %v736_v52, %v1623_v49  ;;  %v626_v53 = vrot.slane %v625_v35, 1  ;;  %v808_v2 = vrot.slane %v807_v39, 2  ;;  %v632_v10 = vadd.f32 %v631_v36, %v630_v31 }
 0x14e   : > { %v814_v1 = vadd.f32 %v813_v60, %v802_v50  ;;  %v542_v20 = vmul.f32 %v1659_v42, %v514_v62  ;;  %v745_v17 = vmul.f32 %v737_v18, %v1659_v42  ;;  %v746_v11 = vmul.f32 %v738_v38, %v1659_v42 }
 0x14f   : > { %v569_v30 = vadd.f32 %v1669_v58, %v541_v41  ;;  %v627_v21 = vadd.f32 %v626_v53, %v625_v35  ;;  %v809_v26 = vadd.f32 %v808_v2, %v807_v39  ;;  %v633_v27 = vrot.slane %v632_v10, 2 }
 0x150   : > { %v815_v61 = vrot.slane %v814_v1, 4  ;;  %v570_v0 = vadd.f32 %v1669_v58, %v542_v20  ;;  %v753_v18 = vadd.f32 %v745_v17, %v1669_v58  ;;  %v754_v50 = vadd.f32 %v746_v11, %v1669_v58  ;;  %v1707_v2 = vpop.permute.xlu0 %559 }
 0x151   : > { %577 = vst [vmem:[%s1682_s30 + $0x10] sm:$0xff] %v569_v30  ;;  %v567_v62 = vadd.f32 %v1679_v46, %v539_v54  ;;  %v637_v29 = vmul.f32 0.03125, %v627_v21  ;;  %v810_v19 = vrot.slane %v809_v26, 1  ;;  %v634_v28 = vadd.f32 %v633_v27, %v632_v10 }
 0x152   : > { %v816_v31 = vadd.f32 %v815_v61, %v814_v1  ;;  %578 = vst [vmem:[%s1682_s30 + $0x18] sm:$0xff] %v570_v0  ;;  %761 = vst [vmem:[%s1682_s30 + $0x90] sm:$0xff] %v753_v18  ;;  %v568_v52 = vadd.f32 %v1679_v46, %v540_v45  ;;  %v751_v38 = vadd.f32 %v743_v57, %v1679_v46 }
 0x153   : > { %762 = vst [vmem:[%s1682_s30 + $0x98] sm:$0xff] %v754_v50  ;;  %575 = vst [vmem:[%s1682_s30] sm:$0xff] %v567_v62  ;;  %v752_v56 = vadd.f32 %v744_v40, %v1679_v46  ;;  %v545_v54 = vmul.f32 %v1641_v16, %v1631_v37  ;;  %v639_v34 = vadd.f32 1e-05, %v637_v29  ;;  %v811_v35 = vadd.f32 %v810_v19, %v809_v26 }
 0x154   : > { %v635_v39 = vrot.slane %v634_v28, 1  ;;  %v817_v36 = vrot.slane %v816_v31, 2  ;;  %576 = vst [vmem:[%s1682_s30 + $0x8] sm:$0xff] %v568_v52  ;;  %759 = vst [vmem:[%s1682_s30 + $0x80] sm:$0xff] %v751_v38  ;;  %v546_v60 = vmul.f32 %v1641_v16, %v518_v7  ;;  %v749_v57 = vmul.f32 %v1639_v3, %v1641_v16 }
 0x155   : > { %760 = vst [vmem:[%s1682_s30 + $0x88] sm:$0xff] %v752_v56  ;;  %v573_v45 = vadd.f32 %v1688_v47, %v545_v54  ;;  %v750_v40 = vmul.f32 %v742_v22, %v1641_v16  ;;  %1082 = vrsqrt.f32 %v639_v34  ;;  %v821_v37 = vmul.f32 0.03125, %v811_v35 }
 0x156   : > { %v636_v41 = vadd.f32 %v635_v39, %v634_v28  ;;  %v818_v53 = vadd.f32 %v817_v36, %v816_v31  ;;  %v574_v10 = vadd.f32 %v1688_v47, %v546_v60  ;;  %v757_v7 = vadd.f32 %v749_v57, %v1688_v47 }
 0x157   : > { %581 = vst [vmem:[%s1682_s30 + $0x30] sm:$0xff] %v573_v45  ;;  %v758_v1 = vadd.f32 %v750_v40, %v1688_v47  ;;  %v543_v3 = vmul.f32 %v1596_v63, %v1628_v23  ;;  %v823_v22 = vadd.f32 1e-05, %v821_v37  ;;  %v544_v11 = vmul.f32 %v1596_v63, %v1656_v13 }
 0x158   : > { %v638_v20 = vmul.f32 0.03125, %v636_v41  ;;  %v819_v17 = vrot.slane %v818_v53, 1  ;;  %582 = vst [vmem:[%s1682_s30 + $0x38] sm:$0xff] %v574_v10  ;;  %765 = vst [vmem:[%s1682_s30 + $0xb0] sm:$0xff] %v757_v7  ;;  %v747_v21 = vmul.f32 %v1636_v25, %v1596_v63  ;;  %v748_v23 = vmul.f32 %v1664_v33, %v1596_v63 }
 0x159   : > { %766 = vst [vmem:[%s1682_s30 + $0xb8] sm:$0xff] %v758_v1  ;;  %v571_v30 = vadd.f32 %v1707_v2, %v543_v3  ;;  %1084 = vrsqrt.f32 %v823_v22  ;;  %v572_v61 = vadd.f32 %v1707_v2, %v544_v11 }
 0x15a   : > { %v640_v26 = vadd.f32 1e-05, %v638_v20  ;;  %v820_v27 = vadd.f32 %v819_v17, %v818_v53  ;;  %v755_v13 = vadd.f32 %v747_v21, %v1707_v2  ;;  %v756_v0 = vadd.f32 %v748_v23, %v1707_v2 }
 0x15b   : > { %579 = vst [vmem:[%s1682_s30 + $0x20] sm:$0xff] %v571_v30  ;;  %580 = vst [vmem:[%s1682_s30 + $0x28] sm:$0xff] %v572_v61 }
 0x15c   : > { %1086 = vrsqrt.f32 %v640_v26  ;;  %v822_v18 = vmul.f32 0.03125, %v820_v27  ;;  %763 = vst [vmem:[%s1682_s30 + $0xa0] sm:$0xff] %v755_v13  ;;  %764 = vst [vmem:[%s1682_s30 + $0xa8] sm:$0xff] %v756_v0 }
 0x15e   : > { %v824_v50 = vadd.f32 1e-05, %v822_v18 }
 0x15f   : > { %v1083_v25 = vpop.eup %1082 }
 0x160   : > { %1088 = vrsqrt.f32 %v824_v50  ;;  %v643_v33 = vmul.f32 %v1083_v25, %v1550_v59  ;;  %v645_v62 = vmul.f32 %v1083_v25, %v1553_v4  ;;  %v647_v29 = vmul.f32 %v1083_v25, %v1556_v44 }
 0x161   : > { %v649_v19 = vmul.f32 %v1083_v25, %v1559_v9 }
 0x162   : > { %v651_v28 = vmul.f32 %v643_v33, %v1623_v49  ;;  %v653_v31 = vmul.f32 %v645_v62, %v1659_v42  ;;  %v655_v38 = vmul.f32 %v647_v29, %v1596_v63 }
 0x163   : > { %v657_v52 = vmul.f32 %v649_v19, %v1641_v16  ;;  %v1085_v56 = vpop.eup %1084 }
 0x164   : > { %v827_v54 = vmul.f32 %v1085_v56, %v1568_v12  ;;  %v829_v59 = vmul.f32 %v1085_v56, %v1571_v14  ;;  %v831_v4 = vmul.f32 %v1085_v56, %v1574_v6  ;;  %v833_v44 = vmul.f32 %v1085_v56, %v1577_v8 }
 0x165   : > { %v661_v34 = vadd.f32 %v653_v31, %v1669_v58  ;;  %v659_v35 = vadd.f32 %v651_v28, %v1679_v46  ;;  %v665_v39 = vadd.f32 %v657_v52, %v1688_v47  ;;  %v663_v36 = vadd.f32 %v655_v38, %v1707_v2 }
 0x166   : > { %v1087_v9 = vpop.eup %1086  ;;  %v835_v8 = vmul.f32 %v827_v54, %v1623_v49  ;;  %v837_v45 = vmul.f32 %v829_v59, %v1659_v42  ;;  %v841_v57 = vmul.f32 %v833_v44, %v1641_v16 }
 0x167   : > { %v644_v12 = vmul.f32 %v1087_v9, %v1588_v15  ;;  %v646_v60 = vmul.f32 %v1087_v9, %v1591_v51  ;;  %v648_v14 = vmul.f32 %v1087_v9, %v1594_v55  ;;  %v650_v6 = vmul.f32 %v1087_v9, %v1599_v32  ;;  %669 = vst [vmem:[%s1682_s30 + $0x50] sm:$0xff] %v661_v34 }
 0x168   : > { %667 = vst [vmem:[%s1682_s30 + $0x40] sm:$0xff] %v659_v35  ;;  %673 = vst [vmem:[%s1682_s30 + $0x70] sm:$0xff] %v665_v39  ;;  %v839_v15 = vmul.f32 %v831_v4, %v1596_v63  ;;  %v845_v41 = vadd.f32 %v837_v45, %v1669_v58  ;;  %v843_v53 = vadd.f32 %v835_v8, %v1679_v46 }
 0x169   : > { %671 = vst [vmem:[%s1682_s30 + $0x60] sm:$0xff] %v663_v36  ;;  %v652_v51 = vmul.f32 %v644_v12, %v1623_v49  ;;  %v654_v55 = vmul.f32 %v646_v60, %v1659_v42  ;;  %v658_v32 = vmul.f32 %v650_v6, %v1641_v16  ;;  %v656_v40 = vmul.f32 %v648_v14, %v1596_v63 }
 0x16a   : > { %v1089_v37 = vpop.eup %1088  ;;  %v849_v10 = vadd.f32 %v841_v57, %v1688_v47  ;;  %v847_v7 = vadd.f32 %v839_v15, %v1707_v2  ;;  %853 = vst [vmem:[%s1682_s30 + $0xd0] sm:$0xff] %v845_v41  ;;  %851 = vst [vmem:[%s1682_s30 + $0xc0] sm:$0xff] %v843_v53 }
 0x16b   : > { %v828_v1 = vmul.f32 %v1089_v37, %v1612_v24  ;;  %v830_v3 = vmul.f32 %v1089_v37, %v1615_v43  ;;  %v832_v22 = vmul.f32 %v1089_v37, %v1618_v5  ;;  %v834_v20 = vmul.f32 %v1089_v37, %v1621_v48 }
 0x16c   : > { %v662_v17 = vadd.f32 %v654_v55, %v1669_v58  ;;  %v660_v11 = vadd.f32 %v652_v51, %v1679_v46  ;;  %v666_v24 = vadd.f32 %v658_v32, %v1688_v47  ;;  %857 = vst [vmem:[%s1682_s30 + $0xf0] sm:$0xff] %v849_v10  ;;  %v664_v43 = vadd.f32 %v656_v40, %v1707_v2 }
 0x16d   : > { %855 = vst [vmem:[%s1682_s30 + $0xe0] sm:$0xff] %v847_v7  ;;  %v836_v5 = vmul.f32 %v828_v1, %v1623_v49  ;;  %v838_v48 = vmul.f32 %v830_v3, %v1659_v42  ;;  %v842_v30 = vmul.f32 %v834_v20, %v1641_v16  ;;  %v840_v21 = vmul.f32 %v832_v22, %v1596_v63 }
 0x16e   : > { %670 = vst [vmem:[%s1682_s30 + $0x58] sm:$0xff] %v662_v17  ;;  %668 = vst [vmem:[%s1682_s30 + $0x48] sm:$0xff] %v660_v11 }
 0x16f   : > { %674 = vst [vmem:[%s1682_s30 + $0x78] sm:$0xff] %v666_v24  ;;  %672 = vst [vmem:[%s1682_s30 + $0x68] sm:$0xff] %v664_v43  ;;  %v846_v49 = vadd.f32 %v838_v48, %v1669_v58  ;;  %v844_v16 = vadd.f32 %v836_v5, %v1679_v46  ;;  %v850_v63 = vadd.f32 %v842_v30, %v1688_v47 }
 0x170   : > { %v848_v42 = vadd.f32 %v840_v21, %v1707_v2 }
 0x171   : > { %854 = vst [vmem:[%s1682_s30 + $0xd8] sm:$0xff] %v846_v49  ;;  %852 = vst [vmem:[%s1682_s30 + $0xc8] sm:$0xff] %v844_v16 }
 0x172   : > { %858 = vst [vmem:[%s1682_s30 + $0xf8] sm:$0xff] %v850_v63  ;;  %856 = vst [vmem:[%s1682_s30 + $0xe8] sm:$0xff] %v848_v42 }
 0x173   : > { %1103 = shalt.err (!%p1100_p5)
}
 0x174   : > { %s1104_s19 = scalar_lea.hbm %s1793_s7, 4096  ;;  %s1108_s26 = scalar_lea.hbm %s1856_s3, 8192 }
 0x175   : > { %p1105_p6 = scmp.ne.s32.totalorder %s1793_s7, %s1104_s19  ;;  %p1109_p10 = scmp.lt.u32.totalorder %s1793_s7, %s1856_s3 }
 0x176   : > { %p1110_p11 = scmp.lt.u32.totalorder %s1108_s26, %s1104_s19  ;;  %p1112_p13 = scmp.lt.u32.totalorder %s1104_s19, %s1793_s7 }
 0x177   : > { %p1106_p7 = pnand %p1105_p6, %p1235_p4 }
 0x178   : > { %p1111_p12 = por %p1110_p11, %p1109_p10 }
 0x179   : > { %p1107_p9 = pneg %p1106_p7 }
 0x17a   : > { %p1113_p0 = por %p1112_p13, %p1111_p12 }
 0x17c   : > { %p1114_p1 = pnand %p1113_p0, %p1107_p9 }
 0x17e   : > { %1117 = shalt.err (!%p1114_p1)
}
 0x17f   : > { %s1173_s29 = smov 256   ;;  %s1174_s30 = smov 16  }
 0x180   : > { %1013 = dma.vmem_to_hbm [thread:$0]  (%p1235_p4), %s1795_s5, 4096, %s1793_s7, %s1807_s8, %s1173_s29, %s1173_s29, %s1174_s30  }
 0x181 PF: > { %p1019_p2 = scmp.ge.s32.totalorder %s1168_s17, 2  ;;  %s890_s4 = sand.u32 1, %s1148_s12  }
 0x182   : > { %s891_s15 = scalar_lea.sflag [#allocation3], %s890_s4 }
 0x183   : > { %p1016_p3 = pnand %p1019_p2, %p1242_p8 }
 0x185   : > { %1143 = dma.done.wait (!%p1016_p3), %s891_s15, 4096  }
 0x186   : > { %1145 = vsyncadd (!%p1016_p3), %s891_s15, 4294963200  ;;  %s16_s17 = sadd.s32 1, %s1168_s17   ;;  %s1865_s12 = smov %s1152_s13 }
 0x187   : > { %p13_p5 = scmp.ge.s32.totalorder %s16_s17, 4   ;;  %s1866_s13 = smov %s1156_s14 }
 0x188   : > { %s1867_s14 = smov %s1248_s25  ;;  %s1868_s15 = smov %s1164_s16 }
 0x189   : > { %s1869_s16 = smov %s1871_s20  ;;  %15 = sbr.rel (!%p13_p5) target bundleno = 4 (0x4), region = 68 }
 0x190   :  { %896 = vsyncpa [#allocation3], 1 }
 0x191   :  { %898 = vsyncpa [#allocation3 + $0x1], 1 }

</bundles_post_ra>
